<compile_context>
chip_gen: v5e
topology: v5e:2x2
jax: 0.10.0
libtpu: 0.0.40
codegen_flags: <defaults>
</compile_context>

<pallas_src>
import math

import jax
import jax.numpy as jnp
from jax.experimental import pallas as pl
from jax.experimental.pallas import tpu as pltpu  # noqa: F401  (kept for parity)

# ---------------- tiny GPT-2-like config (consistent with the module) --------
B, T = 2, 8            # batch, sequence
H, NH = 32, 2          # hidden size, heads
HD = H // NH           # head dim
V = 128                # vocab size (lane-friendly)
L = 2                  # number of transformer blocks
MLP = 4 * H            # MLP inner dim
EPS = 1e-5
F32 = jnp.float32
MXU_DT = jnp.bfloat16  # MXU operand dtype (set to jnp.float32 for strict-f32 / v5e)
BT = B * T
assert (T & (T - 1)) == 0, "T must be a power of two for the shift-based mask"
_TSHIFT = int(math.log2(T))


# ---------------------------- shared math helpers -----------------------------
def _layer_norm(x, g, b):
    mu = jnp.mean(x, axis=-1, keepdims=True)
    var = jnp.mean((x - mu) ** 2, axis=-1, keepdims=True)
    return (x - mu) * jax.lax.rsqrt(var + EPS) * g + b


def _gelu_new(x):
    # GPT-2 "gelu_new" (tanh approximation) -> EUP tanh
    return 0.5 * x * (1.0 + jnp.tanh(0.7978845608028654 * (x + 0.044715 * x * x * x)))


_TB_DIMS = (((1,), (1,)), ((), ()))   # dot_general: contract last dim of both (B^T)


# ---------------------------- the single fused kernel --------------------------
def _generator_kernel(ids_ref, wpe_ref, wte_ref,
                      ln1g_ref, ln1b_ref, wqkv_ref, bqkv_ref,
                      wproj_ref, bproj_ref, ln2g_ref, ln2b_ref,
                      wfc_ref, bfc_ref, wout_ref, bout_ref,
                      lnfg_ref, lnfb_ref,
                      hs_ref, logits_ref, probs_ref):
    # ---- embedding: one-hot gather on the MXU (exact in f32) + positions ----
    vocab_iota = jax.lax.broadcasted_iota(jnp.int32, (BT, V), 1)
    onehot = (vocab_iota == ids_ref[...]).astype(F32)                   # [BT, V]
    x = jnp.dot(onehot, wte_ref[...], preferred_element_type=F32) + wpe_ref[...]
    hs_ref[0] = x                        # HF hidden_states[0] = embedding output

    # ---- additive block-diagonal causal bias, computed once ----
    ri = jax.lax.broadcasted_iota(jnp.int32, (BT, BT), 0)
    ci = jax.lax.broadcasted_iota(jnp.int32, (BT, BT), 1)
    keep = (ci <= ri) & ((ri >> _TSHIFT) == (ci >> _TSHIFT))   # causal & same batch
    bias = jnp.where(keep, 0.0, -1e30).astype(F32)

    scale = 1.0 / math.sqrt(HD)

    for l in range(L):
        # ---- attention: LN1 fused with per-head fused-QKV / attn / proj ----
        h1 = _layer_norm(x, ln1g_ref[l], ln1b_ref[l]).astype(MXU_DT)    # [BT, H]
        attn = None
        for hh in range(NH):
            qkv = jnp.dot(h1, wqkv_ref[l, hh],
                          preferred_element_type=F32) + bqkv_ref[l, hh]  # [BT, 3HD]
            q = qkv[:, 0 * HD:1 * HD].astype(MXU_DT)                     # [BT, HD]
            k = qkv[:, 1 * HD:2 * HD].astype(MXU_DT)
            v = qkv[:, 2 * HD:3 * HD].astype(MXU_DT)
            # scores over the whole [BT, BT] tile (cross-batch masked by `bias`)
            s = jax.lax.dot_general(q, k, _TB_DIMS,
                                    preferred_element_type=F32)          # [BT, BT]
            s = s * scale + bias
            s = s - jnp.max(s, axis=-1, keepdims=True)
            p = jnp.exp(s)
            p = p * pl.reciprocal(jnp.sum(p, axis=-1, keepdims=True),
                                  approx=True)
            o = jnp.dot(p.astype(MXU_DT), v,
                        preferred_element_type=F32)                      # [BT, HD]
            c = jnp.dot(o.astype(MXU_DT), wproj_ref[l, hh],
                        preferred_element_type=F32)                      # [BT, H]
            attn = c if attn is None else attn + c
        x = x + attn + bproj_ref[l]

        # ---- MLP: LN2 fused with FC(+GELU) and output projection ----
        h2 = _layer_norm(x, ln2g_ref[l], ln2b_ref[l]).astype(MXU_DT)
        mid = _gelu_new(jnp.dot(h2, wfc_ref[l],
                                preferred_element_type=F32) + bfc_ref[l])
        x = x + jnp.dot(mid.astype(MXU_DT), wout_ref[l],
                        preferred_element_type=F32) + bout_ref[l]

        if l < L - 1:
            hs_ref[l + 1] = x            # HF: intermediate block outputs

    # ---- final LN + tied lm_head (transposed-B contraction) + vocab softmax ----
    xf = _layer_norm(x, lnfg_ref[...], lnfb_ref[...])
    hs_ref[L] = xf                       # HF: last hidden state is post-ln_f
    logits = jax.lax.dot_general(
        xf.astype(MXU_DT), wte_ref[...].astype(MXU_DT), _TB_DIMS,
        preferred_element_type=F32)      # x @ wte.T without transpose
    logits_ref[...] = logits
    m = jnp.max(logits, axis=-1, keepdims=True)
    e = jnp.exp(logits - m)
    probs_ref[...] = e / jnp.sum(e, axis=-1, keepdims=True)   # exact divide


# No grid: every operand is a whole-array VMEM block; total working set ~150 KB,
# well inside the default scoped VMEM limit on v5e/v6e/v7x.
_fused_generator = pl.pallas_call(
    _generator_kernel,
    out_shape=(
        jax.ShapeDtypeStruct((L + 1, BT, H), F32),   # hidden states
        jax.ShapeDtypeStruct((BT, V), F32),          # logits
        jax.ShapeDtypeStruct((BT, V), F32),          # softmax probs
    ),
)


# ---------------------------- parameters --------------------------------------
def init_params(key):
    std = 0.02
    keys = iter(jax.random.split(key, 4 + L * 6))

    def nrm(shape):
        return std * jax.random.normal(next(keys), shape, dtype=F32)

    params = {
        "wte": nrm((V, H)),     # token embedding (tied with lm_head)
        "wpe": nrm((T, H)),     # position embedding
        "lnf_g": jnp.ones((H,), F32),
        "lnf_b": jnp.zeros((H,), F32),
        "layers": [],
    }
    for _ in range(L):
        params["layers"].append({
            "ln1_g": jnp.ones((H,), F32), "ln1_b": jnp.zeros((H,), F32),
            "w_qkv": nrm((H, 3 * H)), "b_qkv": jnp.zeros((3 * H,), F32),
            "w_proj": nrm((H, H)), "b_proj": jnp.zeros((H,), F32),
            "ln2_g": jnp.ones((H,), F32), "ln2_b": jnp.zeros((H,), F32),
            "w_fc": nrm((H, MLP)), "b_fc": jnp.zeros((MLP,), F32),
            "w_out": nrm((MLP, H)), "b_out": jnp.zeros((H,), F32),
        })
    return params


def pack_params(params):
    """Repack GPT-2-style weights into the kernel's VMEM-friendly layout:
    layers stacked, Q/K/V fused per head ([L,NH,H,3*HD]) so the kernel runs one
    QKV matmul per head with only in-vreg lane slicing, wpe pre-tiled to [BT,H],
    and the big matmul weights stored in the MXU operand dtype (bf16)."""
    def stack(name):
        return jnp.stack([lp[name] for lp in params["layers"]], axis=0)

    w_qkv = stack("w_qkv")                    # [L, H, 3H]
    b_qkv = stack("b_qkv")                    # [L, 3H]

    def head_split_w(block):                  # [L, H, H] -> [L, H, NH, HD]
        return block.reshape(L, H, NH, HD)

    qw = head_split_w(w_qkv[:, :, 0 * H:1 * H])
    kw = head_split_w(w_qkv[:, :, 1 * H:2 * H])
    vw = head_split_w(w_qkv[:, :, 2 * H:3 * H])
    wqkv = jnp.concatenate([qw, kw, vw], axis=-1).transpose(0, 2, 1, 3)  # [L,NH,H,3HD]

    def head_split_b(blk):                    # [L, H] -> [L, NH, HD]
        return blk.reshape(L, NH, HD)

    qb = head_split_b(b_qkv[:, 0 * H:1 * H])
    kb = head_split_b(b_qkv[:, 1 * H:2 * H])
    vb = head_split_b(b_qkv[:, 2 * H:3 * H])
    bqkv = jnp.concatenate([qb, kb, vb], axis=-1).reshape(L, NH, 1, 3 * HD)

    return {
        "wte": params["wte"],                              # f32 (exact gather + lm_head)
        "wpe_full": jnp.tile(params["wpe"], (B, 1)),       # [BT, H]
        "lnf_g": params["lnf_g"].reshape(1, H),
        "lnf_b": params["lnf_b"].reshape(1, H),
        "ln1_g": stack("ln1_g").reshape(L, 1, H),
        "ln1_b": stack("ln1_b").reshape(L, 1, H),
        "ln2_g": stack("ln2_g").reshape(L, 1, H),
        "ln2_b": stack("ln2_b").reshape(L, 1, H),
        "wqkv": wqkv.astype(MXU_DT), "bqkv": bqkv,
        "wproj": stack("w_proj").reshape(L, NH, HD, H).astype(MXU_DT),
        "bproj": stack("b_proj").reshape(L, 1, H),
        "wfc": stack("w_fc").astype(MXU_DT), "bfc": stack("b_fc").reshape(L, 1, MLP),
        "wout": stack("w_out").astype(MXU_DT), "bout": stack("b_out").reshape(L, 1, H),
    }


# ---------------------------- forward pass -------------------------------------
class PredictionOutput:
    def __init__(self, logits, hidden_states):
        self.logits = logits
        self.hidden_states = hidden_states


class GeneratorOutput:
    def __init__(self, prediction=None, classProbs=None, discPreds=None,
                 inputValuePreds=None, alterationsValuePreds=None):
        self.prediction = prediction
        self.classProbs = classProbs
        self.discPreds = discPreds
        self.inputValuePreds = inputValuePreds
        self.alterationsValuePreds = alterationsValuePreds


@jax.jit
def generator_core(packed, input_ids):
    ids = input_ids.reshape(BT, 1).astype(jnp.int32)
    hs, logits, probs = _fused_generator(
        ids, packed["wpe_full"], packed["wte"],
        packed["ln1_g"], packed["ln1_b"], packed["wqkv"], packed["bqkv"],
        packed["wproj"], packed["bproj"],
        packed["ln2_g"], packed["ln2_b"],
        packed["wfc"], packed["bfc"], packed["wout"], packed["bout"],
        packed["lnf_g"], packed["lnf_b"],
    )
    logits = logits.reshape(B, T, V)
    probs = probs.reshape(B, T, V)
    hidden_states = tuple(hs.reshape(L + 1, B, T, H)[i] for i in range(L + 1))
    return logits, hidden_states, probs


def generator_forward(packed, input_ids):
    # Mirrors Generator.forward: run LM with output_hidden_states, softmax logits.
    logits, hidden_states, probs = generator_core(packed, input_ids)
    return GeneratorOutput(prediction=PredictionOutput(logits, hidden_states),
                           classProbs=probs)


# TODO(synk): use_cache / incremental decoding path is not implemented
# (useCache is False in the reference module's default forward).


# ---------------------------- pure-JAX reference (for checking) ---------------
def reference_forward(params, input_ids):
    x = params["wte"][input_ids] + params["wpe"][None]
    hidden = [x]
    xf = x.reshape(BT, H).astype(F32)
    for lp in params["layers"]:
        h = _layer_norm(xf, lp["ln1_g"][None], lp["ln1_b"][None])
        qkv = h @ lp["w_qkv"] + lp["b_qkv"]
        q, k, v = jnp.split(qkv, 3, axis=-1)

        def heads(t):
            return t.reshape(B, T, NH, HD).transpose(0, 2, 1, 3)

        qh, kh, vh = heads(q), heads(k), heads(v)
        s = jnp.einsum("bhqd,bhkd->bhqk", qh, kh) / math.sqrt(HD)
        mask = jnp.tril(jnp.ones((T, T), bool))
        s = jnp.where(mask, s, -1e30)
        p = jax.nn.softmax(s, axis=-1)
        o = jnp.einsum("bhqk,bhkd->bhqd", p, vh)
        o = o.transpose(0, 2, 1, 3).reshape(BT, H)
        xf = xf + o @ lp["w_proj"] + lp["b_proj"]
        h2 = _layer_norm(xf, lp["ln2_g"][None], lp["ln2_b"][None])
        m = _gelu_new(h2 @ lp["w_fc"] + lp["b_fc"])
        xf = xf + m @ lp["w_out"] + lp["b_out"]
        hidden.append(xf.reshape(B, T, H))
    xf = _layer_norm(xf, params["lnf_g"][None], params["lnf_b"][None])
    hidden[-1] = xf.reshape(B, T, H)     # HF: final hidden state is post-ln_f
    logits = xf @ params["wte"].T
    probs = jax.nn.softmax(logits, axis=-1)
    return logits.reshape(B, T, V), tuple(hidden), probs.reshape(B, T, V)


if __name__ == "__main__":
    key = jax.random.PRNGKey(0)
    pkey, ikey = jax.random.split(key)
    params = init_params(pkey)
    input_ids = jax.random.randint(ikey, (B, T), 0, V, dtype=jnp.int32)

    packed = pack_params(params)
    out = generator_forward(packed, input_ids)
    jax.block_until_ready(out.classProbs)
    jax.block_until_ready(out.prediction.logits)

    # sanity checks
    assert out.prediction.logits.shape == (B, T, V)
    assert out.classProbs.shape == (B, T, V)
    assert len(out.prediction.hidden_states) == L + 1
    psum = jnp.sum(out.classProbs, axis=-1)
    assert bool(jnp.all(jnp.abs(psum - 1.0) < 1e-3))   # exact final softmax divide

    # cross-check against a pure-JAX f32 reference of the same model
    ref_logits, ref_hidden, ref_probs = reference_forward(params, input_ids)

    def close(a, b, tol=2e-2):
        scale = jnp.maximum(jnp.max(jnp.abs(b)), 1e-6)
        return bool(jnp.max(jnp.abs(a - b)) <= tol * scale)

    assert close(out.prediction.logits, ref_logits)
    assert close(out.classProbs, ref_probs)
    for a, r in zip(out.prediction.hidden_states, ref_hidden):
        assert close(a, r)

    print("KERNEL_OK")
</pallas_src>

<mosaic_0001>
module attributes {stable_mosaic.version = 11 : i64} {
  func.func @_generator_kernel(%arg0: memref<16x1xi32, #tpu.memory_space<vmem>>, %arg1: memref<16x32xf32, #tpu.memory_space<vmem>>, %arg2: memref<128x32xf32, #tpu.memory_space<vmem>>, %arg3: memref<2x1x32xf32, #tpu.memory_space<vmem>>, %arg4: memref<2x1x32xf32, #tpu.memory_space<vmem>>, %arg5: memref<2x2x32x48xbf16, #tpu.memory_space<vmem>>, %arg6: memref<2x2x1x48xf32, #tpu.memory_space<vmem>>, %arg7: memref<2x2x16x32xbf16, #tpu.memory_space<vmem>>, %arg8: memref<2x1x32xf32, #tpu.memory_space<vmem>>, %arg9: memref<2x1x32xf32, #tpu.memory_space<vmem>>, %arg10: memref<2x1x32xf32, #tpu.memory_space<vmem>>, %arg11: memref<2x32x128xbf16, #tpu.memory_space<vmem>>, %arg12: memref<2x1x128xf32, #tpu.memory_space<vmem>>, %arg13: memref<2x128x32xbf16, #tpu.memory_space<vmem>>, %arg14: memref<2x1x32xf32, #tpu.memory_space<vmem>>, %arg15: memref<1x32xf32, #tpu.memory_space<vmem>>, %arg16: memref<1x32xf32, #tpu.memory_space<vmem>>, %arg17: memref<3x16x32xf32, #tpu.memory_space<vmem>>, %arg18: memref<16x128xf32, #tpu.memory_space<vmem>>, %arg19: memref<16x128xf32, #tpu.memory_space<vmem>>) attributes {dimension_semantics = [], scalar_prefetch = 0 : i64, scratch_operands = 0 : i64, tpu.core_type = #tpu.core_type<tc>} {
    %0 = tpu.iota {dimensions = array<i32: 1>} : vector<16x128xi32>
    %c0 = arith.constant 0 : index
    %c0_0 = arith.constant 0 : index
    %1 = vector.load %arg0[%c0, %c0_0] : memref<16x1xi32, #tpu.memory_space<vmem>>, vector<16x1xi32>
    %2 = vector.broadcast %1 : vector<16x1xi32> to vector<16x128xi32>
    %3 = arith.cmpi eq, %0, %2 : vector<16x128xi32>
    %4 = arith.extui %3 : vector<16x128xi1> to vector<16x128xi32>
    %5 = arith.sitofp %4 : vector<16x128xi32> to vector<16x128xf32>
    %c0_1 = arith.constant 0 : index
    %c0_2 = arith.constant 0 : index
    %6 = vector.load %arg2[%c0_1, %c0_2] : memref<128x32xf32, #tpu.memory_space<vmem>>, vector<128x32xf32>
    %cst = arith.constant dense<0.000000e+00> : vector<16x32xf32>
    %7 = tpu.matmul %5, %6, %cst {dimension_numbers = #tpu.dot_dimension_numbers<[1], [0], [0], [1], [0, 0, 1, 1], [], []>} : vector<16x128xf32>, vector<128x32xf32>, vector<16x32xf32> -> vector<16x32xf32>
    %c0_3 = arith.constant 0 : index
    %c0_4 = arith.constant 0 : index
    %8 = vector.load %arg1[%c0_3, %c0_4] : memref<16x32xf32, #tpu.memory_space<vmem>>, vector<16x32xf32>
    %9 = arith.addf %7, %8 : vector<16x32xf32>
    %c0_5 = arith.constant 0 : index
    %c0_6 = arith.constant 0 : index
    %c0_7 = arith.constant 0 : index
    %10 = vector.load %arg17[%c0_5, %c0_6, %c0_7] : memref<3x16x32xf32, #tpu.memory_space<vmem>>, vector<1x16x32xf32>
    %11 = vector.shape_cast %10 : vector<1x16x32xf32> to vector<16x32xf32>
    %12 = vector.shape_cast %9 : vector<16x32xf32> to vector<1x16x32xf32>
    tpu.vector_store %arg17[%c0_5, %c0_6, %c0_7], %12 {strides = array<i32>} : memref<3x16x32xf32, #tpu.memory_space<vmem>>, vector<1x16x32xf32>,
    %13 = tpu.iota {dimensions = array<i32: 0>} : vector<16x16xi32>
    %14 = tpu.iota {dimensions = array<i32: 1>} : vector<16x16xi32>
    %15 = arith.cmpi sle, %14, %13 : vector<16x16xi32>
    %c3_i32 = arith.constant 3 : i32
    %16 = vector.broadcast %c3_i32 : i32 to vector<16x16xi32>
    %17 = arith.shrsi %13, %16 : vector<16x16xi32>
    %c3_i32_8 = arith.constant 3 : i32
    %18 = vector.broadcast %c3_i32_8 : i32 to vector<16x16xi32>
    %19 = arith.shrsi %14, %18 : vector<16x16xi32>
    %20 = arith.cmpi eq, %17, %19 : vector<16x16xi32>
    %21 = arith.andi %15, %20 : vector<16x16xi1>
    %cst_9 = arith.constant 0.000000e+00 : f32
    %cst_10 = arith.constant -1.000000e+30 : f32
    %22 = vector.broadcast %cst_9 : f32 to vector<16x16xf32>
    %23 = vector.broadcast %cst_10 : f32 to vector<16x16xf32>
    %24 = arith.select %21, %22, %23 : vector<16x16xi1>, vector<16x16xf32>
    %c0_11 = arith.constant 0 : index
    %c0_12 = arith.constant 0 : index
    %c0_13 = arith.constant 0 : index
    %25 = vector.load %arg3[%c0_11, %c0_12, %c0_13] : memref<2x1x32xf32, #tpu.memory_space<vmem>>, vector<1x1x32xf32>
    %26 = vector.shape_cast %25 : vector<1x1x32xf32> to vector<1x32xf32>
    %c0_14 = arith.constant 0 : index
    %c0_15 = arith.constant 0 : index
    %c0_16 = arith.constant 0 : index
    %27 = vector.load %arg4[%c0_14, %c0_15, %c0_16] : memref<2x1x32xf32, #tpu.memory_space<vmem>>, vector<1x1x32xf32>
    %28 = vector.shape_cast %27 : vector<1x1x32xf32> to vector<1x32xf32>
    %cst_17 = arith.constant dense<0.000000e+00> : vector<16xf32>
    %29 = vector.multi_reduction <add>, %9, %cst_17 [1] : vector<16x32xf32> to vector<16xf32>
    %30 = vector.shape_cast %29 : vector<16xf32> to vector<16x1xf32>
    %cst_18 = arith.constant 3.200000e+01 : f32
    %31 = vector.broadcast %cst_18 : f32 to vector<16x1xf32>
    %32 = arith.divf %30, %31 : vector<16x1xf32>
    %33 = vector.broadcast %32 : vector<16x1xf32> to vector<16x32xf32>
    %34 = arith.subf %9, %33 : vector<16x32xf32>
    %35 = arith.mulf %34, %34 : vector<16x32xf32>
    %cst_19 = arith.constant dense<0.000000e+00> : vector<16xf32>
    %36 = vector.multi_reduction <add>, %35, %cst_19 [1] : vector<16x32xf32> to vector<16xf32>
    %37 = vector.shape_cast %36 : vector<16xf32> to vector<16x1xf32>
    %cst_20 = arith.constant 3.200000e+01 : f32
    %38 = vector.broadcast %cst_20 : f32 to vector<16x1xf32>
    %39 = arith.divf %37, %38 : vector<16x1xf32>
    %40 = vector.broadcast %32 : vector<16x1xf32> to vector<16x32xf32>
    %41 = arith.subf %9, %40 : vector<16x32xf32>
    %cst_21 = arith.constant 9.99999974E-6 : f32
    %42 = vector.broadcast %cst_21 : f32 to vector<16x1xf32>
    %43 = arith.addf %39, %42 : vector<16x1xf32>
    %44 = math.rsqrt %43 : vector<16x1xf32>
    %45 = vector.broadcast %44 : vector<16x1xf32> to vector<16x32xf32>
    %46 = arith.mulf %41, %45 : vector<16x32xf32>
    %47 = vector.broadcast %26 : vector<1x32xf32> to vector<16x32xf32>
    %48 = arith.mulf %46, %47 : vector<16x32xf32>
    %49 = vector.broadcast %28 : vector<1x32xf32> to vector<16x32xf32>
    %50 = arith.addf %48, %49 : vector<16x32xf32>
    %51 = arith.truncf %50 : vector<16x32xf32> to vector<16x32xbf16>
    %c0_22 = arith.constant 0 : index
    %c0_23 = arith.constant 0 : index
    %c0_24 = arith.constant 0 : index
    %c0_25 = arith.constant 0 : index
    %52 = vector.load %arg5[%c0_22, %c0_23, %c0_24, %c0_25] : memref<2x2x32x48xbf16, #tpu.memory_space<vmem>>, vector<1x1x32x48xbf16>
    %53 = vector.shape_cast %52 : vector<1x1x32x48xbf16> to vector<32x48xbf16>
    %cst_26 = arith.constant dense<0.000000e+00> : vector<16x48xf32>
    %54 = tpu.matmul %51, %53, %cst_26 {dimension_numbers = #tpu.dot_dimension_numbers<[1], [0], [0], [1], [0, 0, 1, 1], [], []>} : vector<16x32xbf16>, vector<32x48xbf16>, vector<16x48xf32> -> vector<16x48xf32>
    %c0_27 = arith.constant 0 : index
    %c0_28 = arith.constant 0 : index
    %c0_29 = arith.constant 0 : index
    %c0_30 = arith.constant 0 : index
    %55 = vector.load %arg6[%c0_27, %c0_28, %c0_29, %c0_30] : memref<2x2x1x48xf32, #tpu.memory_space<vmem>>, vector<1x1x1x48xf32>
    %56 = vector.shape_cast %55 : vector<1x1x1x48xf32> to vector<1x48xf32>
    %57 = vector.broadcast %56 : vector<1x48xf32> to vector<16x48xf32>
    %58 = arith.addf %54, %57 : vector<16x48xf32>
    %59 = vector.extract_strided_slice %58 {offsets = [0, 0], sizes = [16, 16], strides = [1, 1]} : vector<16x48xf32> to vector<16x16xf32>
    %60 = arith.truncf %59 : vector<16x16xf32> to vector<16x16xbf16>
    %61 = vector.extract_strided_slice %58 {offsets = [0, 16], sizes = [16, 16], strides = [1, 1]} : vector<16x48xf32> to vector<16x16xf32>
    %62 = arith.truncf %61 : vector<16x16xf32> to vector<16x16xbf16>
    %63 = vector.extract_strided_slice %58 {offsets = [0, 32], sizes = [16, 16], strides = [1, 1]} : vector<16x48xf32> to vector<16x16xf32>
    %64 = arith.truncf %63 : vector<16x16xf32> to vector<16x16xbf16>
    %cst_31 = arith.constant dense<0.000000e+00> : vector<16x16xf32>
    %65 = tpu.matmul %60, %62, %cst_31 {dimension_numbers = #tpu.dot_dimension_numbers<[1], [1], [0], [0], [0, 0, 1, 0], [], []>} : vector<16x16xbf16>, vector<16x16xbf16>, vector<16x16xf32> -> vector<16x16xf32>
    %cst_32 = arith.constant 2.500000e-01 : f32
    %66 = vector.broadcast %cst_32 : f32 to vector<16x16xf32>
    %67 = arith.mulf %65, %66 : vector<16x16xf32>
    %68 = arith.addf %67, %24 : vector<16x16xf32>
    %cst_33 = arith.constant dense<0xFF800000> : vector<16xf32>
    %69 = vector.multi_reduction <maximumf>, %68, %cst_33 [1] : vector<16x16xf32> to vector<16xf32>
    %70 = vector.shape_cast %69 : vector<16xf32> to vector<16x1xf32>
    %71 = vector.broadcast %70 : vector<16x1xf32> to vector<16x16xf32>
    %72 = arith.subf %68, %71 : vector<16x16xf32>
    %73 = math.exp %72 : vector<16x16xf32>
    %cst_34 = arith.constant dense<0.000000e+00> : vector<16xf32>
    %74 = vector.multi_reduction <add>, %73, %cst_34 [1] : vector<16x16xf32> to vector<16xf32>
    %75 = vector.shape_cast %74 : vector<16xf32> to vector<16x1xf32>
    %76 = tpu.reciprocal %75 {approx = true} : vector<16x1xf32> -> vector<16x1xf32>
    %77 = vector.broadcast %76 : vector<16x1xf32> to vector<16x16xf32>
    %78 = arith.mulf %73, %77 : vector<16x16xf32>
    %79 = arith.truncf %78 : vector<16x16xf32> to vector<16x16xbf16>
    %cst_35 = arith.constant dense<0.000000e+00> : vector<16x16xf32>
    %80 = tpu.matmul %79, %64, %cst_35 {dimension_numbers = #tpu.dot_dimension_numbers<[1], [0], [0], [1], [0, 0, 1, 1], [], []>} : vector<16x16xbf16>, vector<16x16xbf16>, vector<16x16xf32> -> vector<16x16xf32>
    %81 = arith.truncf %80 : vector<16x16xf32> to vector<16x16xbf16>
    %c0_36 = arith.constant 0 : index
    %c0_37 = arith.constant 0 : index
    %c0_38 = arith.constant 0 : index
    %c0_39 = arith.constant 0 : index
    %82 = vector.load %arg7[%c0_36, %c0_37, %c0_38, %c0_39] : memref<2x2x16x32xbf16, #tpu.memory_space<vmem>>, vector<1x1x16x32xbf16>
    %83 = vector.shape_cast %82 : vector<1x1x16x32xbf16> to vector<16x32xbf16>
    %cst_40 = arith.constant dense<0.000000e+00> : vector<16x32xf32>
    %84 = tpu.matmul %81, %83, %cst_40 {dimension_numbers = #tpu.dot_dimension_numbers<[1], [0], [0], [1], [0, 0, 1, 1], [], []>} : vector<16x16xbf16>, vector<16x32xbf16>, vector<16x32xf32> -> vector<16x32xf32>
    %c0_41 = arith.constant 0 : index
    %c1 = arith.constant 1 : index
    %c0_42 = arith.constant 0 : index
    %c0_43 = arith.constant 0 : index
    %85 = vector.load %arg5[%c0_41, %c1, %c0_42, %c0_43] : memref<2x2x32x48xbf16, #tpu.memory_space<vmem>>, vector<1x1x32x48xbf16>
    %86 = vector.shape_cast %85 : vector<1x1x32x48xbf16> to vector<32x48xbf16>
    %cst_44 = arith.constant dense<0.000000e+00> : vector<16x48xf32>
    %87 = tpu.matmul %51, %86, %cst_44 {dimension_numbers = #tpu.dot_dimension_numbers<[1], [0], [0], [1], [0, 0, 1, 1], [], []>} : vector<16x32xbf16>, vector<32x48xbf16>, vector<16x48xf32> -> vector<16x48xf32>
    %c0_45 = arith.constant 0 : index
    %c1_46 = arith.constant 1 : index
    %c0_47 = arith.constant 0 : index
    %c0_48 = arith.constant 0 : index
    %88 = vector.load %arg6[%c0_45, %c1_46, %c0_47, %c0_48] : memref<2x2x1x48xf32, #tpu.memory_space<vmem>>, vector<1x1x1x48xf32>
    %89 = vector.shape_cast %88 : vector<1x1x1x48xf32> to vector<1x48xf32>
    %90 = vector.broadcast %89 : vector<1x48xf32> to vector<16x48xf32>
    %91 = arith.addf %87, %90 : vector<16x48xf32>
    %92 = vector.extract_strided_slice %91 {offsets = [0, 0], sizes = [16, 16], strides = [1, 1]} : vector<16x48xf32> to vector<16x16xf32>
    %93 = arith.truncf %92 : vector<16x16xf32> to vector<16x16xbf16>
    %94 = vector.extract_strided_slice %91 {offsets = [0, 16], sizes = [16, 16], strides = [1, 1]} : vector<16x48xf32> to vector<16x16xf32>
    %95 = arith.truncf %94 : vector<16x16xf32> to vector<16x16xbf16>
    %96 = vector.extract_strided_slice %91 {offsets = [0, 32], sizes = [16, 16], strides = [1, 1]} : vector<16x48xf32> to vector<16x16xf32>
    %97 = arith.truncf %96 : vector<16x16xf32> to vector<16x16xbf16>
    %cst_49 = arith.constant dense<0.000000e+00> : vector<16x16xf32>
    %98 = tpu.matmul %93, %95, %cst_49 {dimension_numbers = #tpu.dot_dimension_numbers<[1], [1], [0], [0], [0, 0, 1, 0], [], []>} : vector<16x16xbf16>, vector<16x16xbf16>, vector<16x16xf32> -> vector<16x16xf32>
    %cst_50 = arith.constant 2.500000e-01 : f32
    %99 = vector.broadcast %cst_50 : f32 to vector<16x16xf32>
    %100 = arith.mulf %98, %99 : vector<16x16xf32>
    %101 = arith.addf %100, %24 : vector<16x16xf32>
    %cst_51 = arith.constant dense<0xFF800000> : vector<16xf32>
    %102 = vector.multi_reduction <maximumf>, %101, %cst_51 [1] : vector<16x16xf32> to vector<16xf32>
    %103 = vector.shape_cast %102 : vector<16xf32> to vector<16x1xf32>
    %104 = vector.broadcast %103 : vector<16x1xf32> to vector<16x16xf32>
    %105 = arith.subf %101, %104 : vector<16x16xf32>
    %106 = math.exp %105 : vector<16x16xf32>
    %cst_52 = arith.constant dense<0.000000e+00> : vector<16xf32>
    %107 = vector.multi_reduction <add>, %106, %cst_52 [1] : vector<16x16xf32> to vector<16xf32>
    %108 = vector.shape_cast %107 : vector<16xf32> to vector<16x1xf32>
    %109 = tpu.reciprocal %108 {approx = true} : vector<16x1xf32> -> vector<16x1xf32>
    %110 = vector.broadcast %109 : vector<16x1xf32> to vector<16x16xf32>
    %111 = arith.mulf %106, %110 : vector<16x16xf32>
    %112 = arith.truncf %111 : vector<16x16xf32> to vector<16x16xbf16>
    %cst_53 = arith.constant dense<0.000000e+00> : vector<16x16xf32>
    %113 = tpu.matmul %112, %97, %cst_53 {dimension_numbers = #tpu.dot_dimension_numbers<[1], [0], [0], [1], [0, 0, 1, 1], [], []>} : vector<16x16xbf16>, vector<16x16xbf16>, vector<16x16xf32> -> vector<16x16xf32>
    %114 = arith.truncf %113 : vector<16x16xf32> to vector<16x16xbf16>
    %c0_54 = arith.constant 0 : index
    %c1_55 = arith.constant 1 : index
    %c0_56 = arith.constant 0 : index
    %c0_57 = arith.constant 0 : index
    %115 = vector.load %arg7[%c0_54, %c1_55, %c0_56, %c0_57] : memref<2x2x16x32xbf16, #tpu.memory_space<vmem>>, vector<1x1x16x32xbf16>
    %116 = vector.shape_cast %115 : vector<1x1x16x32xbf16> to vector<16x32xbf16>
    %cst_58 = arith.constant dense<0.000000e+00> : vector<16x32xf32>
    %117 = tpu.matmul %114, %116, %cst_58 {dimension_numbers = #tpu.dot_dimension_numbers<[1], [0], [0], [1], [0, 0, 1, 1], [], []>} : vector<16x16xbf16>, vector<16x32xbf16>, vector<16x32xf32> -> vector<16x32xf32>
    %118 = arith.addf %84, %117 : vector<16x32xf32>
    %119 = arith.addf %9, %118 : vector<16x32xf32>
    %c0_59 = arith.constant 0 : index
    %c0_60 = arith.constant 0 : index
    %c0_61 = arith.constant 0 : index
    %120 = vector.load %arg8[%c0_59, %c0_60, %c0_61] : memref<2x1x32xf32, #tpu.memory_space<vmem>>, vector<1x1x32xf32>
    %121 = vector.shape_cast %120 : vector<1x1x32xf32> to vector<1x32xf32>
    %122 = vector.broadcast %121 : vector<1x32xf32> to vector<16x32xf32>
    %123 = arith.addf %119, %122 : vector<16x32xf32>
    %c0_62 = arith.constant 0 : index
    %c0_63 = arith.constant 0 : index
    %c0_64 = arith.constant 0 : index
    %124 = vector.load %arg9[%c0_62, %c0_63, %c0_64] : memref<2x1x32xf32, #tpu.memory_space<vmem>>, vector<1x1x32xf32>
    %125 = vector.shape_cast %124 : vector<1x1x32xf32> to vector<1x32xf32>
    %c0_65 = arith.constant 0 : index
    %c0_66 = arith.constant 0 : index
    %c0_67 = arith.constant 0 : index
    %126 = vector.load %arg10[%c0_65, %c0_66, %c0_67] : memref<2x1x32xf32, #tpu.memory_space<vmem>>, vector<1x1x32xf32>
    %127 = vector.shape_cast %126 : vector<1x1x32xf32> to vector<1x32xf32>
    %cst_68 = arith.constant dense<0.000000e+00> : vector<16xf32>
    %128 = vector.multi_reduction <add>, %123, %cst_68 [1] : vector<16x32xf32> to vector<16xf32>
    %129 = vector.shape_cast %128 : vector<16xf32> to vector<16x1xf32>
    %cst_69 = arith.constant 3.200000e+01 : f32
    %130 = vector.broadcast %cst_69 : f32 to vector<16x1xf32>
    %131 = arith.divf %129, %130 : vector<16x1xf32>
    %132 = vector.broadcast %131 : vector<16x1xf32> to vector<16x32xf32>
    %133 = arith.subf %123, %132 : vector<16x32xf32>
    %134 = arith.mulf %133, %133 : vector<16x32xf32>
    %cst_70 = arith.constant dense<0.000000e+00> : vector<16xf32>
    %135 = vector.multi_reduction <add>, %134, %cst_70 [1] : vector<16x32xf32> to vector<16xf32>
    %136 = vector.shape_cast %135 : vector<16xf32> to vector<16x1xf32>
    %cst_71 = arith.constant 3.200000e+01 : f32
    %137 = vector.broadcast %cst_71 : f32 to vector<16x1xf32>
    %138 = arith.divf %136, %137 : vector<16x1xf32>
    %139 = vector.broadcast %131 : vector<16x1xf32> to vector<16x32xf32>
    %140 = arith.subf %123, %139 : vector<16x32xf32>
    %cst_72 = arith.constant 9.99999974E-6 : f32
    %141 = vector.broadcast %cst_72 : f32 to vector<16x1xf32>
    %142 = arith.addf %138, %141 : vector<16x1xf32>
    %143 = math.rsqrt %142 : vector<16x1xf32>
    %144 = vector.broadcast %143 : vector<16x1xf32> to vector<16x32xf32>
    %145 = arith.mulf %140, %144 : vector<16x32xf32>
    %146 = vector.broadcast %125 : vector<1x32xf32> to vector<16x32xf32>
    %147 = arith.mulf %145, %146 : vector<16x32xf32>
    %148 = vector.broadcast %127 : vector<1x32xf32> to vector<16x32xf32>
    %149 = arith.addf %147, %148 : vector<16x32xf32>
    %150 = arith.truncf %149 : vector<16x32xf32> to vector<16x32xbf16>
    %c0_73 = arith.constant 0 : index
    %c0_74 = arith.constant 0 : index
    %c0_75 = arith.constant 0 : index
    %151 = vector.load %arg11[%c0_73, %c0_74, %c0_75] : memref<2x32x128xbf16, #tpu.memory_space<vmem>>, vector<1x32x128xbf16>
    %152 = vector.shape_cast %151 : vector<1x32x128xbf16> to vector<32x128xbf16>
    %cst_76 = arith.constant dense<0.000000e+00> : vector<16x128xf32>
    %153 = tpu.matmul %150, %152, %cst_76 {dimension_numbers = #tpu.dot_dimension_numbers<[1], [0], [0], [1], [0, 0, 1, 1], [], []>} : vector<16x32xbf16>, vector<32x128xbf16>, vector<16x128xf32> -> vector<16x128xf32>
    %c0_77 = arith.constant 0 : index
    %c0_78 = arith.constant 0 : index
    %c0_79 = arith.constant 0 : index
    %154 = vector.load %arg12[%c0_77, %c0_78, %c0_79] : memref<2x1x128xf32, #tpu.memory_space<vmem>>, vector<1x1x128xf32>
    %155 = vector.shape_cast %154 : vector<1x1x128xf32> to vector<1x128xf32>
    %156 = vector.broadcast %155 : vector<1x128xf32> to vector<16x128xf32>
    %157 = arith.addf %153, %156 : vector<16x128xf32>
    %cst_80 = arith.constant 5.000000e-01 : f32
    %158 = vector.broadcast %cst_80 : f32 to vector<16x128xf32>
    %159 = arith.mulf %158, %157 : vector<16x128xf32>
    %cst_81 = arith.constant 4.471500e-02 : f32
    %160 = vector.broadcast %cst_81 : f32 to vector<16x128xf32>
    %161 = arith.mulf %160, %157 : vector<16x128xf32>
    %162 = arith.mulf %161, %157 : vector<16x128xf32>
    %163 = arith.mulf %162, %157 : vector<16x128xf32>
    %164 = arith.addf %157, %163 : vector<16x128xf32>
    %cst_82 = arith.constant 0.797884583 : f32
    %165 = vector.broadcast %cst_82 : f32 to vector<16x128xf32>
    %166 = arith.mulf %165, %164 : vector<16x128xf32>
    %167 = math.tanh %166 : vector<16x128xf32>
    %cst_83 = arith.constant 1.000000e+00 : f32
    %168 = vector.broadcast %cst_83 : f32 to vector<16x128xf32>
    %169 = arith.addf %168, %167 : vector<16x128xf32>
    %170 = arith.mulf %159, %169 : vector<16x128xf32>
    %171 = arith.truncf %170 : vector<16x128xf32> to vector<16x128xbf16>
    %c0_84 = arith.constant 0 : index
    %c0_85 = arith.constant 0 : index
    %c0_86 = arith.constant 0 : index
    %172 = vector.load %arg13[%c0_84, %c0_85, %c0_86] : memref<2x128x32xbf16, #tpu.memory_space<vmem>>, vector<1x128x32xbf16>
    %173 = vector.shape_cast %172 : vector<1x128x32xbf16> to vector<128x32xbf16>
    %cst_87 = arith.constant dense<0.000000e+00> : vector<16x32xf32>
    %174 = tpu.matmul %171, %173, %cst_87 {dimension_numbers = #tpu.dot_dimension_numbers<[1], [0], [0], [1], [0, 0, 1, 1], [], []>} : vector<16x128xbf16>, vector<128x32xbf16>, vector<16x32xf32> -> vector<16x32xf32>
    %175 = arith.addf %123, %174 : vector<16x32xf32>
    %c0_88 = arith.constant 0 : index
    %c0_89 = arith.constant 0 : index
    %c0_90 = arith.constant 0 : index
    %176 = vector.load %arg14[%c0_88, %c0_89, %c0_90] : memref<2x1x32xf32, #tpu.memory_space<vmem>>, vector<1x1x32xf32>
    %177 = vector.shape_cast %176 : vector<1x1x32xf32> to vector<1x32xf32>
    %178 = vector.broadcast %177 : vector<1x32xf32> to vector<16x32xf32>
    %179 = arith.addf %175, %178 : vector<16x32xf32>
    %c1_91 = arith.constant 1 : index
    %c0_92 = arith.constant 0 : index
    %c0_93 = arith.constant 0 : index
    %180 = vector.load %arg17[%c1_91, %c0_92, %c0_93] : memref<3x16x32xf32, #tpu.memory_space<vmem>>, vector<1x16x32xf32>
    %181 = vector.shape_cast %180 : vector<1x16x32xf32> to vector<16x32xf32>
    %182 = vector.shape_cast %179 : vector<16x32xf32> to vector<1x16x32xf32>
    tpu.vector_store %arg17[%c1_91, %c0_92, %c0_93], %182 {strides = array<i32>} : memref<3x16x32xf32, #tpu.memory_space<vmem>>, vector<1x16x32xf32>,
    %c1_94 = arith.constant 1 : index
    %c0_95 = arith.constant 0 : index
    %c0_96 = arith.constant 0 : index
    %183 = vector.load %arg3[%c1_94, %c0_95, %c0_96] : memref<2x1x32xf32, #tpu.memory_space<vmem>>, vector<1x1x32xf32>
    %184 = vector.shape_cast %183 : vector<1x1x32xf32> to vector<1x32xf32>
    %c1_97 = arith.constant 1 : index
    %c0_98 = arith.constant 0 : index
    %c0_99 = arith.constant 0 : index
    %185 = vector.load %arg4[%c1_97, %c0_98, %c0_99] : memref<2x1x32xf32, #tpu.memory_space<vmem>>, vector<1x1x32xf32>
    %186 = vector.shape_cast %185 : vector<1x1x32xf32> to vector<1x32xf32>
    %cst_100 = arith.constant dense<0.000000e+00> : vector<16xf32>
    %187 = vector.multi_reduction <add>, %179, %cst_100 [1] : vector<16x32xf32> to vector<16xf32>
    %188 = vector.shape_cast %187 : vector<16xf32> to vector<16x1xf32>
    %cst_101 = arith.constant 3.200000e+01 : f32
    %189 = vector.broadcast %cst_101 : f32 to vector<16x1xf32>
    %190 = arith.divf %188, %189 : vector<16x1xf32>
    %191 = vector.broadcast %190 : vector<16x1xf32> to vector<16x32xf32>
    %192 = arith.subf %179, %191 : vector<16x32xf32>
    %193 = arith.mulf %192, %192 : vector<16x32xf32>
    %cst_102 = arith.constant dense<0.000000e+00> : vector<16xf32>
    %194 = vector.multi_reduction <add>, %193, %cst_102 [1] : vector<16x32xf32> to vector<16xf32>
    %195 = vector.shape_cast %194 : vector<16xf32> to vector<16x1xf32>
    %cst_103 = arith.constant 3.200000e+01 : f32
    %196 = vector.broadcast %cst_103 : f32 to vector<16x1xf32>
    %197 = arith.divf %195, %196 : vector<16x1xf32>
    %198 = vector.broadcast %190 : vector<16x1xf32> to vector<16x32xf32>
    %199 = arith.subf %179, %198 : vector<16x32xf32>
    %cst_104 = arith.constant 9.99999974E-6 : f32
    %200 = vector.broadcast %cst_104 : f32 to vector<16x1xf32>
    %201 = arith.addf %197, %200 : vector<16x1xf32>
    %202 = math.rsqrt %201 : vector<16x1xf32>
    %203 = vector.broadcast %202 : vector<16x1xf32> to vector<16x32xf32>
    %204 = arith.mulf %199, %203 : vector<16x32xf32>
    %205 = vector.broadcast %184 : vector<1x32xf32> to vector<16x32xf32>
    %206 = arith.mulf %204, %205 : vector<16x32xf32>
    %207 = vector.broadcast %186 : vector<1x32xf32> to vector<16x32xf32>
    %208 = arith.addf %206, %207 : vector<16x32xf32>
    %209 = arith.truncf %208 : vector<16x32xf32> to vector<16x32xbf16>
    %c1_105 = arith.constant 1 : index
    %c0_106 = arith.constant 0 : index
    %c0_107 = arith.constant 0 : index
    %c0_108 = arith.constant 0 : index
    %210 = vector.load %arg5[%c1_105, %c0_106, %c0_107, %c0_108] : memref<2x2x32x48xbf16, #tpu.memory_space<vmem>>, vector<1x1x32x48xbf16>
    %211 = vector.shape_cast %210 : vector<1x1x32x48xbf16> to vector<32x48xbf16>
    %cst_109 = arith.constant dense<0.000000e+00> : vector<16x48xf32>
    %212 = tpu.matmul %209, %211, %cst_109 {dimension_numbers = #tpu.dot_dimension_numbers<[1], [0], [0], [1], [0, 0, 1, 1], [], []>} : vector<16x32xbf16>, vector<32x48xbf16>, vector<16x48xf32> -> vector<16x48xf32>
    %c1_110 = arith.constant 1 : index
    %c0_111 = arith.constant 0 : index
    %c0_112 = arith.constant 0 : index
    %c0_113 = arith.constant 0 : index
    %213 = vector.load %arg6[%c1_110, %c0_111, %c0_112, %c0_113] : memref<2x2x1x48xf32, #tpu.memory_space<vmem>>, vector<1x1x1x48xf32>
    %214 = vector.shape_cast %213 : vector<1x1x1x48xf32> to vector<1x48xf32>
    %215 = vector.broadcast %214 : vector<1x48xf32> to vector<16x48xf32>
    %216 = arith.addf %212, %215 : vector<16x48xf32>
    %217 = vector.extract_strided_slice %216 {offsets = [0, 0], sizes = [16, 16], strides = [1, 1]} : vector<16x48xf32> to vector<16x16xf32>
    %218 = arith.truncf %217 : vector<16x16xf32> to vector<16x16xbf16>
    %219 = vector.extract_strided_slice %216 {offsets = [0, 16], sizes = [16, 16], strides = [1, 1]} : vector<16x48xf32> to vector<16x16xf32>
    %220 = arith.truncf %219 : vector<16x16xf32> to vector<16x16xbf16>
    %221 = vector.extract_strided_slice %216 {offsets = [0, 32], sizes = [16, 16], strides = [1, 1]} : vector<16x48xf32> to vector<16x16xf32>
    %222 = arith.truncf %221 : vector<16x16xf32> to vector<16x16xbf16>
    %cst_114 = arith.constant dense<0.000000e+00> : vector<16x16xf32>
    %223 = tpu.matmul %218, %220, %cst_114 {dimension_numbers = #tpu.dot_dimension_numbers<[1], [1], [0], [0], [0, 0, 1, 0], [], []>} : vector<16x16xbf16>, vector<16x16xbf16>, vector<16x16xf32> -> vector<16x16xf32>
    %cst_115 = arith.constant 2.500000e-01 : f32
    %224 = vector.broadcast %cst_115 : f32 to vector<16x16xf32>
    %225 = arith.mulf %223, %224 : vector<16x16xf32>
    %226 = arith.addf %225, %24 : vector<16x16xf32>
    %cst_116 = arith.constant dense<0xFF800000> : vector<16xf32>
    %227 = vector.multi_reduction <maximumf>, %226, %cst_116 [1] : vector<16x16xf32> to vector<16xf32>
    %228 = vector.shape_cast %227 : vector<16xf32> to vector<16x1xf32>
    %229 = vector.broadcast %228 : vector<16x1xf32> to vector<16x16xf32>
    %230 = arith.subf %226, %229 : vector<16x16xf32>
    %231 = math.exp %230 : vector<16x16xf32>
    %cst_117 = arith.constant dense<0.000000e+00> : vector<16xf32>
    %232 = vector.multi_reduction <add>, %231, %cst_117 [1] : vector<16x16xf32> to vector<16xf32>
    %233 = vector.shape_cast %232 : vector<16xf32> to vector<16x1xf32>
    %234 = tpu.reciprocal %233 {approx = true} : vector<16x1xf32> -> vector<16x1xf32>
    %235 = vector.broadcast %234 : vector<16x1xf32> to vector<16x16xf32>
    %236 = arith.mulf %231, %235 : vector<16x16xf32>
    %237 = arith.truncf %236 : vector<16x16xf32> to vector<16x16xbf16>
    %cst_118 = arith.constant dense<0.000000e+00> : vector<16x16xf32>
    %238 = tpu.matmul %237, %222, %cst_118 {dimension_numbers = #tpu.dot_dimension_numbers<[1], [0], [0], [1], [0, 0, 1, 1], [], []>} : vector<16x16xbf16>, vector<16x16xbf16>, vector<16x16xf32> -> vector<16x16xf32>
    %239 = arith.truncf %238 : vector<16x16xf32> to vector<16x16xbf16>
    %c1_119 = arith.constant 1 : index
    %c0_120 = arith.constant 0 : index
    %c0_121 = arith.constant 0 : index
    %c0_122 = arith.constant 0 : index
    %240 = vector.load %arg7[%c1_119, %c0_120, %c0_121, %c0_122] : memref<2x2x16x32xbf16, #tpu.memory_space<vmem>>, vector<1x1x16x32xbf16>
    %241 = vector.shape_cast %240 : vector<1x1x16x32xbf16> to vector<16x32xbf16>
    %cst_123 = arith.constant dense<0.000000e+00> : vector<16x32xf32>
    %242 = tpu.matmul %239, %241, %cst_123 {dimension_numbers = #tpu.dot_dimension_numbers<[1], [0], [0], [1], [0, 0, 1, 1], [], []>} : vector<16x16xbf16>, vector<16x32xbf16>, vector<16x32xf32> -> vector<16x32xf32>
    %c1_124 = arith.constant 1 : index
    %c1_125 = arith.constant 1 : index
    %c0_126 = arith.constant 0 : index
    %c0_127 = arith.constant 0 : index
    %243 = vector.load %arg5[%c1_124, %c1_125, %c0_126, %c0_127] : memref<2x2x32x48xbf16, #tpu.memory_space<vmem>>, vector<1x1x32x48xbf16>
    %244 = vector.shape_cast %243 : vector<1x1x32x48xbf16> to vector<32x48xbf16>
    %cst_128 = arith.constant dense<0.000000e+00> : vector<16x48xf32>
    %245 = tpu.matmul %209, %244, %cst_128 {dimension_numbers = #tpu.dot_dimension_numbers<[1], [0], [0], [1], [0, 0, 1, 1], [], []>} : vector<16x32xbf16>, vector<32x48xbf16>, vector<16x48xf32> -> vector<16x48xf32>
    %c1_129 = arith.constant 1 : index
    %c1_130 = arith.constant 1 : index
    %c0_131 = arith.constant 0 : index
    %c0_132 = arith.constant 0 : index
    %246 = vector.load %arg6[%c1_129, %c1_130, %c0_131, %c0_132] : memref<2x2x1x48xf32, #tpu.memory_space<vmem>>, vector<1x1x1x48xf32>
    %247 = vector.shape_cast %246 : vector<1x1x1x48xf32> to vector<1x48xf32>
    %248 = vector.broadcast %247 : vector<1x48xf32> to vector<16x48xf32>
    %249 = arith.addf %245, %248 : vector<16x48xf32>
    %250 = vector.extract_strided_slice %249 {offsets = [0, 0], sizes = [16, 16], strides = [1, 1]} : vector<16x48xf32> to vector<16x16xf32>
    %251 = arith.truncf %250 : vector<16x16xf32> to vector<16x16xbf16>
    %252 = vector.extract_strided_slice %249 {offsets = [0, 16], sizes = [16, 16], strides = [1, 1]} : vector<16x48xf32> to vector<16x16xf32>
    %253 = arith.truncf %252 : vector<16x16xf32> to vector<16x16xbf16>
    %254 = vector.extract_strided_slice %249 {offsets = [0, 32], sizes = [16, 16], strides = [1, 1]} : vector<16x48xf32> to vector<16x16xf32>
    %255 = arith.truncf %254 : vector<16x16xf32> to vector<16x16xbf16>
    %cst_133 = arith.constant dense<0.000000e+00> : vector<16x16xf32>
    %256 = tpu.matmul %251, %253, %cst_133 {dimension_numbers = #tpu.dot_dimension_numbers<[1], [1], [0], [0], [0, 0, 1, 0], [], []>} : vector<16x16xbf16>, vector<16x16xbf16>, vector<16x16xf32> -> vector<16x16xf32>
    %cst_134 = arith.constant 2.500000e-01 : f32
    %257 = vector.broadcast %cst_134 : f32 to vector<16x16xf32>
    %258 = arith.mulf %256, %257 : vector<16x16xf32>
    %259 = arith.addf %258, %24 : vector<16x16xf32>
    %cst_135 = arith.constant dense<0xFF800000> : vector<16xf32>
    %260 = vector.multi_reduction <maximumf>, %259, %cst_135 [1] : vector<16x16xf32> to vector<16xf32>
    %261 = vector.shape_cast %260 : vector<16xf32> to vector<16x1xf32>
    %262 = vector.broadcast %261 : vector<16x1xf32> to vector<16x16xf32>
    %263 = arith.subf %259, %262 : vector<16x16xf32>
    %264 = math.exp %263 : vector<16x16xf32>
    %cst_136 = arith.constant dense<0.000000e+00> : vector<16xf32>
    %265 = vector.multi_reduction <add>, %264, %cst_136 [1] : vector<16x16xf32> to vector<16xf32>
    %266 = vector.shape_cast %265 : vector<16xf32> to vector<16x1xf32>
    %267 = tpu.reciprocal %266 {approx = true} : vector<16x1xf32> -> vector<16x1xf32>
    %268 = vector.broadcast %267 : vector<16x1xf32> to vector<16x16xf32>
    %269 = arith.mulf %264, %268 : vector<16x16xf32>
    %270 = arith.truncf %269 : vector<16x16xf32> to vector<16x16xbf16>
    %cst_137 = arith.constant dense<0.000000e+00> : vector<16x16xf32>
    %271 = tpu.matmul %270, %255, %cst_137 {dimension_numbers = #tpu.dot_dimension_numbers<[1], [0], [0], [1], [0, 0, 1, 1], [], []>} : vector<16x16xbf16>, vector<16x16xbf16>, vector<16x16xf32> -> vector<16x16xf32>
    %272 = arith.truncf %271 : vector<16x16xf32> to vector<16x16xbf16>
    %c1_138 = arith.constant 1 : index
    %c1_139 = arith.constant 1 : index
    %c0_140 = arith.constant 0 : index
    %c0_141 = arith.constant 0 : index
    %273 = vector.load %arg7[%c1_138, %c1_139, %c0_140, %c0_141] : memref<2x2x16x32xbf16, #tpu.memory_space<vmem>>, vector<1x1x16x32xbf16>
    %274 = vector.shape_cast %273 : vector<1x1x16x32xbf16> to vector<16x32xbf16>
    %cst_142 = arith.constant dense<0.000000e+00> : vector<16x32xf32>
    %275 = tpu.matmul %272, %274, %cst_142 {dimension_numbers = #tpu.dot_dimension_numbers<[1], [0], [0], [1], [0, 0, 1, 1], [], []>} : vector<16x16xbf16>, vector<16x32xbf16>, vector<16x32xf32> -> vector<16x32xf32>
    %276 = arith.addf %242, %275 : vector<16x32xf32>
    %277 = arith.addf %179, %276 : vector<16x32xf32>
    %c1_143 = arith.constant 1 : index
    %c0_144 = arith.constant 0 : index
    %c0_145 = arith.constant 0 : index
    %278 = vector.load %arg8[%c1_143, %c0_144, %c0_145] : memref<2x1x32xf32, #tpu.memory_space<vmem>>, vector<1x1x32xf32>
    %279 = vector.shape_cast %278 : vector<1x1x32xf32> to vector<1x32xf32>
    %280 = vector.broadcast %279 : vector<1x32xf32> to vector<16x32xf32>
    %281 = arith.addf %277, %280 : vector<16x32xf32>
    %c1_146 = arith.constant 1 : index
    %c0_147 = arith.constant 0 : index
    %c0_148 = arith.constant 0 : index
    %282 = vector.load %arg9[%c1_146, %c0_147, %c0_148] : memref<2x1x32xf32, #tpu.memory_space<vmem>>, vector<1x1x32xf32>
    %283 = vector.shape_cast %282 : vector<1x1x32xf32> to vector<1x32xf32>
    %c1_149 = arith.constant 1 : index
    %c0_150 = arith.constant 0 : index
    %c0_151 = arith.constant 0 : index
    %284 = vector.load %arg10[%c1_149, %c0_150, %c0_151] : memref<2x1x32xf32, #tpu.memory_space<vmem>>, vector<1x1x32xf32>
    %285 = vector.shape_cast %284 : vector<1x1x32xf32> to vector<1x32xf32>
    %cst_152 = arith.constant dense<0.000000e+00> : vector<16xf32>
    %286 = vector.multi_reduction <add>, %281, %cst_152 [1] : vector<16x32xf32> to vector<16xf32>
    %287 = vector.shape_cast %286 : vector<16xf32> to vector<16x1xf32>
    %cst_153 = arith.constant 3.200000e+01 : f32
    %288 = vector.broadcast %cst_153 : f32 to vector<16x1xf32>
    %289 = arith.divf %287, %288 : vector<16x1xf32>
    %290 = vector.broadcast %289 : vector<16x1xf32> to vector<16x32xf32>
    %291 = arith.subf %281, %290 : vector<16x32xf32>
    %292 = arith.mulf %291, %291 : vector<16x32xf32>
    %cst_154 = arith.constant dense<0.000000e+00> : vector<16xf32>
    %293 = vector.multi_reduction <add>, %292, %cst_154 [1] : vector<16x32xf32> to vector<16xf32>
    %294 = vector.shape_cast %293 : vector<16xf32> to vector<16x1xf32>
    %cst_155 = arith.constant 3.200000e+01 : f32
    %295 = vector.broadcast %cst_155 : f32 to vector<16x1xf32>
    %296 = arith.divf %294, %295 : vector<16x1xf32>
    %297 = vector.broadcast %289 : vector<16x1xf32> to vector<16x32xf32>
    %298 = arith.subf %281, %297 : vector<16x32xf32>
    %cst_156 = arith.constant 9.99999974E-6 : f32
    %299 = vector.broadcast %cst_156 : f32 to vector<16x1xf32>
    %300 = arith.addf %296, %299 : vector<16x1xf32>
    %301 = math.rsqrt %300 : vector<16x1xf32>
    %302 = vector.broadcast %301 : vector<16x1xf32> to vector<16x32xf32>
    %303 = arith.mulf %298, %302 : vector<16x32xf32>
    %304 = vector.broadcast %283 : vector<1x32xf32> to vector<16x32xf32>
    %305 = arith.mulf %303, %304 : vector<16x32xf32>
    %306 = vector.broadcast %285 : vector<1x32xf32> to vector<16x32xf32>
    %307 = arith.addf %305, %306 : vector<16x32xf32>
    %308 = arith.truncf %307 : vector<16x32xf32> to vector<16x32xbf16>
    %c1_157 = arith.constant 1 : index
    %c0_158 = arith.constant 0 : index
    %c0_159 = arith.constant 0 : index
    %309 = vector.load %arg11[%c1_157, %c0_158, %c0_159] : memref<2x32x128xbf16, #tpu.memory_space<vmem>>, vector<1x32x128xbf16>
    %310 = vector.shape_cast %309 : vector<1x32x128xbf16> to vector<32x128xbf16>
    %cst_160 = arith.constant dense<0.000000e+00> : vector<16x128xf32>
    %311 = tpu.matmul %308, %310, %cst_160 {dimension_numbers = #tpu.dot_dimension_numbers<[1], [0], [0], [1], [0, 0, 1, 1], [], []>} : vector<16x32xbf16>, vector<32x128xbf16>, vector<16x128xf32> -> vector<16x128xf32>
    %c1_161 = arith.constant 1 : index
    %c0_162 = arith.constant 0 : index
    %c0_163 = arith.constant 0 : index
    %312 = vector.load %arg12[%c1_161, %c0_162, %c0_163] : memref<2x1x128xf32, #tpu.memory_space<vmem>>, vector<1x1x128xf32>
    %313 = vector.shape_cast %312 : vector<1x1x128xf32> to vector<1x128xf32>
    %314 = vector.broadcast %313 : vector<1x128xf32> to vector<16x128xf32>
    %315 = arith.addf %311, %314 : vector<16x128xf32>
    %cst_164 = arith.constant 5.000000e-01 : f32
    %316 = vector.broadcast %cst_164 : f32 to vector<16x128xf32>
    %317 = arith.mulf %316, %315 : vector<16x128xf32>
    %cst_165 = arith.constant 4.471500e-02 : f32
    %318 = vector.broadcast %cst_165 : f32 to vector<16x128xf32>
    %319 = arith.mulf %318, %315 : vector<16x128xf32>
    %320 = arith.mulf %319, %315 : vector<16x128xf32>
    %321 = arith.mulf %320, %315 : vector<16x128xf32>
    %322 = arith.addf %315, %321 : vector<16x128xf32>
    %cst_166 = arith.constant 0.797884583 : f32
    %323 = vector.broadcast %cst_166 : f32 to vector<16x128xf32>
    %324 = arith.mulf %323, %322 : vector<16x128xf32>
    %325 = math.tanh %324 : vector<16x128xf32>
    %cst_167 = arith.constant 1.000000e+00 : f32
    %326 = vector.broadcast %cst_167 : f32 to vector<16x128xf32>
    %327 = arith.addf %326, %325 : vector<16x128xf32>
    %328 = arith.mulf %317, %327 : vector<16x128xf32>
    %329 = arith.truncf %328 : vector<16x128xf32> to vector<16x128xbf16>
    %c1_168 = arith.constant 1 : index
    %c0_169 = arith.constant 0 : index
    %c0_170 = arith.constant 0 : index
    %330 = vector.load %arg13[%c1_168, %c0_169, %c0_170] : memref<2x128x32xbf16, #tpu.memory_space<vmem>>, vector<1x128x32xbf16>
    %331 = vector.shape_cast %330 : vector<1x128x32xbf16> to vector<128x32xbf16>
    %cst_171 = arith.constant dense<0.000000e+00> : vector<16x32xf32>
    %332 = tpu.matmul %329, %331, %cst_171 {dimension_numbers = #tpu.dot_dimension_numbers<[1], [0], [0], [1], [0, 0, 1, 1], [], []>} : vector<16x128xbf16>, vector<128x32xbf16>, vector<16x32xf32> -> vector<16x32xf32>
    %333 = arith.addf %281, %332 : vector<16x32xf32>
    %c1_172 = arith.constant 1 : index
    %c0_173 = arith.constant 0 : index
    %c0_174 = arith.constant 0 : index
    %334 = vector.load %arg14[%c1_172, %c0_173, %c0_174] : memref<2x1x32xf32, #tpu.memory_space<vmem>>, vector<1x1x32xf32>
    %335 = vector.shape_cast %334 : vector<1x1x32xf32> to vector<1x32xf32>
    %336 = vector.broadcast %335 : vector<1x32xf32> to vector<16x32xf32>
    %337 = arith.addf %333, %336 : vector<16x32xf32>
    %c0_175 = arith.constant 0 : index
    %c0_176 = arith.constant 0 : index
    %338 = vector.load %arg15[%c0_175, %c0_176] : memref<1x32xf32, #tpu.memory_space<vmem>>, vector<1x32xf32>
    %c0_177 = arith.constant 0 : index
    %c0_178 = arith.constant 0 : index
    %339 = vector.load %arg16[%c0_177, %c0_178] : memref<1x32xf32, #tpu.memory_space<vmem>>, vector<1x32xf32>
    %cst_179 = arith.constant dense<0.000000e+00> : vector<16xf32>
    %340 = vector.multi_reduction <add>, %337, %cst_179 [1] : vector<16x32xf32> to vector<16xf32>
    %341 = vector.shape_cast %340 : vector<16xf32> to vector<16x1xf32>
    %cst_180 = arith.constant 3.200000e+01 : f32
    %342 = vector.broadcast %cst_180 : f32 to vector<16x1xf32>
    %343 = arith.divf %341, %342 : vector<16x1xf32>
    %344 = vector.broadcast %343 : vector<16x1xf32> to vector<16x32xf32>
    %345 = arith.subf %337, %344 : vector<16x32xf32>
    %346 = arith.mulf %345, %345 : vector<16x32xf32>
    %cst_181 = arith.constant dense<0.000000e+00> : vector<16xf32>
    %347 = vector.multi_reduction <add>, %346, %cst_181 [1] : vector<16x32xf32> to vector<16xf32>
    %348 = vector.shape_cast %347 : vector<16xf32> to vector<16x1xf32>
    %cst_182 = arith.constant 3.200000e+01 : f32
    %349 = vector.broadcast %cst_182 : f32 to vector<16x1xf32>
    %350 = arith.divf %348, %349 : vector<16x1xf32>
    %351 = vector.broadcast %343 : vector<16x1xf32> to vector<16x32xf32>
    %352 = arith.subf %337, %351 : vector<16x32xf32>
    %cst_183 = arith.constant 9.99999974E-6 : f32
    %353 = vector.broadcast %cst_183 : f32 to vector<16x1xf32>
    %354 = arith.addf %350, %353 : vector<16x1xf32>
    %355 = math.rsqrt %354 : vector<16x1xf32>
    %356 = vector.broadcast %355 : vector<16x1xf32> to vector<16x32xf32>
    %357 = arith.mulf %352, %356 : vector<16x32xf32>
    %358 = vector.broadcast %338 : vector<1x32xf32> to vector<16x32xf32>
    %359 = arith.mulf %357, %358 : vector<16x32xf32>
    %360 = vector.broadcast %339 : vector<1x32xf32> to vector<16x32xf32>
    %361 = arith.addf %359, %360 : vector<16x32xf32>
    %c2 = arith.constant 2 : index
    %c0_184 = arith.constant 0 : index
    %c0_185 = arith.constant 0 : index
    %362 = vector.load %arg17[%c2, %c0_184, %c0_185] : memref<3x16x32xf32, #tpu.memory_space<vmem>>, vector<1x16x32xf32>
    %363 = vector.shape_cast %362 : vector<1x16x32xf32> to vector<16x32xf32>
    %364 = vector.shape_cast %361 : vector<16x32xf32> to vector<1x16x32xf32>
    tpu.vector_store %arg17[%c2, %c0_184, %c0_185], %364 {strides = array<i32>} : memref<3x16x32xf32, #tpu.memory_space<vmem>>, vector<1x16x32xf32>,
    %365 = arith.truncf %361 : vector<16x32xf32> to vector<16x32xbf16>
    %c0_186 = arith.constant 0 : index
    %c0_187 = arith.constant 0 : index
    %366 = vector.load %arg2[%c0_186, %c0_187] : memref<128x32xf32, #tpu.memory_space<vmem>>, vector<128x32xf32>
    %367 = arith.truncf %366 : vector<128x32xf32> to vector<128x32xbf16>
    %cst_188 = arith.constant dense<0.000000e+00> : vector<16x128xf32>
    %368 = tpu.matmul %365, %367, %cst_188 {dimension_numbers = #tpu.dot_dimension_numbers<[1], [1], [0], [0], [0, 0, 1, 0], [], []>} : vector<16x32xbf16>, vector<128x32xbf16>, vector<16x128xf32> -> vector<16x128xf32>
    %c0_189 = arith.constant 0 : index
    %c0_190 = arith.constant 0 : index
    %369 = vector.load %arg18[%c0_189, %c0_190] : memref<16x128xf32, #tpu.memory_space<vmem>>, vector<16x128xf32>
    tpu.vector_store %arg18[%c0_189, %c0_190], %368 {strides = array<i32>} : memref<16x128xf32, #tpu.memory_space<vmem>>, vector<16x128xf32>,
    %cst_191 = arith.constant dense<0xFF800000> : vector<16xf32>
    %370 = vector.multi_reduction <maximumf>, %368, %cst_191 [1] : vector<16x128xf32> to vector<16xf32>
    %371 = vector.shape_cast %370 : vector<16xf32> to vector<16x1xf32>
    %372 = vector.broadcast %371 : vector<16x1xf32> to vector<16x128xf32>
    %373 = arith.subf %368, %372 : vector<16x128xf32>
    %374 = math.exp %373 : vector<16x128xf32>
    %cst_192 = arith.constant dense<0.000000e+00> : vector<16xf32>
    %375 = vector.multi_reduction <add>, %374, %cst_192 [1] : vector<16x128xf32> to vector<16xf32>
    %376 = vector.shape_cast %375 : vector<16xf32> to vector<16x1xf32>
    %377 = vector.broadcast %376 : vector<16x1xf32> to vector<16x128xf32>
    %378 = arith.divf %374, %377 : vector<16x128xf32>
    %c0_193 = arith.constant 0 : index
    %c0_194 = arith.constant 0 : index
    %379 = vector.load %arg19[%c0_193, %c0_194] : memref<16x128xf32, #tpu.memory_space<vmem>>, vector<16x128xf32>
    tpu.vector_store %arg19[%c0_193, %c0_194], %378 {strides = array<i32>} : memref<16x128xf32, #tpu.memory_space<vmem>>, vector<16x128xf32>,
    return
  }
}

</mosaic_0001>

<bundles_post_ra>
// kernel: generator_core.1
= control target key start
LH: loop header
LB: loop body
LE: loop exit
PB: predicated region body
PF: predicated region fallthrough
CT: control target
= control target key end

     0   :  { %s2396_s0 = inlined_call_operand.vmem [shape: s32[16,1], index: 0, kind: input, shape index: {}]   ;;  %s2397_s1 = inlined_call_operand.vmem [shape: f32[16,32], index: 1, kind: input, shape index: {}]   ;;  %s2398_s2 = inlined_call_operand.vmem [shape: f32[128,32], index: 2, kind: input, shape index: {}]   ;;  %s2399_s3 = inlined_call_operand.vmem [shape: f32[2,1,32], index: 3, kind: input, shape index: {}]   ;;  %s2400_s4 = inlined_call_operand.vmem [shape: f32[2,1,32], index: 4, kind: input, shape index: {}]   ;;  %s2401_s5 = inlined_call_operand.vmem [shape: bf16[2,2,32,48], index: 5, kind: input, shape index: {}]   ;;  %s2402_s6 = inlined_call_operand.vmem [shape: f32[2,2,1,48], index: 6, kind: input, shape index: {}]   ;;  %s2403_s7 = inlined_call_operand.vmem [shape: bf16[2,2,16,32], index: 7, kind: input, shape index: {}]   ;;  %s2404_s8 = inlined_call_operand.vmem [shape: f32[2,1,32], index: 8, kind: input, shape index: {}]   ;;  %s2405_s9 = inlined_call_operand.vmem [shape: f32[2,1,32], index: 9, kind: input, shape index: {}]   ;;  %s2406_s10 = inlined_call_operand.vmem [shape: f32[2,1,32], index: 10, kind: input, shape index: {}]   ;;  %s2407_s11 = inlined_call_operand.vmem [shape: bf16[2,32,128], index: 11, kind: input, shape index: {}]   ;;  %s2408_s12 = inlined_call_operand.vmem [shape: f32[2,1,128], index: 12, kind: input, shape index: {}]   ;;  %s2409_s13 = inlined_call_operand.vmem [shape: bf16[2,128,32], index: 13, kind: input, shape index: {}]   ;;  %s2410_s14 = inlined_call_operand.vmem [shape: f32[2,1,32], index: 14, kind: input, shape index: {}]   ;;  %s2411_s15 = inlined_call_operand.vmem [shape: f32[1,32], index: 15, kind: input, shape index: {}]   ;;  %s2412_s16 = inlined_call_operand.vmem [shape: f32[1,32], index: 16, kind: input, shape index: {}]   ;;  %s2413_s17 = inlined_call_operand.vmem [shape: f32[3,16,32], index: 17, kind: output, shape index: {0}]   ;;  %s2414_s18 = inlined_call_operand.hbm [shape: f32[16,128], index: 18, kind: output, shape index: {1}]   ;;  %s2415_s19 = inlined_call_operand.hbm [shape: f32[16,128], index: 19, kind: output, shape index: {2}]  }
   0x1   :  { %2420 = sst [smem:[#allocation8_spill]] %s2396_s0 }
   0x2   :  { %2421 = sst [smem:[#allocation9_spill]] %s2397_s1 }
   0x3   :  { %2422 = sst [smem:[#allocation10_spill]] %s2398_s2 }
   0x4   :  { %2423 = sst [smem:[#allocation11_spill]] %s2399_s3 }
   0x5   :  { %25 = vsyncpa [#allocation3], 0  ;;  %s2424_s20 = sld [smem:[#allocation8_spill]]  ;;  %v1824_v2 = vmov 0  }
   0x6   :  { %s2425_s22 = sld [smem:[#allocation10_spill]]  ;;  %1681 = vset.pattern.permute.xlu0 %v1824_v2 }
   0xb   :  { %v64_v0 = vld [vmem:[%s2424_s20] sm:$0xff]  ;;  %v65_v6 = vld [vmem:[%s2424_s20 + $0x8] sm:$0xff] }
   0xc   :  { %v93_v1 = vld [vmem:[%s2425_s22 + $0x78] sm:$0xff]  ;;  %v92_v3 = vld [vmem:[%s2425_s22 + $0x70] sm:$0xff]  ;;  %67 = vperm.xlu0 %1681, %v64_v0   ;;  %v91_v4 = vld [vmem:[%s2425_s22 + $0x68] sm:$0xff] }
   0xd   :  { %96 = vmatpush.msra.mxu0 %v93_v1  ;;  %v90_v5 = vld [vmem:[%s2425_s22 + $0x60] sm:$0xff]  ;;  %v89_v7 = vld [vmem:[%s2425_s22 + $0x58] sm:$0xff]  ;;  %v88_v8 = vld [vmem:[%s2425_s22 + $0x50] sm:$0xff] }
   0xe   :  { %v87_v9 = vld [vmem:[%s2425_s22 + $0x48] sm:$0xff]  ;;  %v86_v10 = vld [vmem:[%s2425_s22 + $0x40] sm:$0xff] }
   0xf   :  { %97 = vmatpush.msra.mxu0 %v92_v3 }
  0x11   :  { %98 = vmatpush.msra.mxu0 %v91_v4 }
  0x13   :  { %99 = vmatpush.msra.mxu0 %v90_v5 }
  0x14   :  { %70 = vperm.xlu0 %1681, %v65_v6  }
  0x15   :  { %100 = vmatpush.msra.mxu0 %v89_v7 }
  0x17   :  { %101 = vmatpush.msra.mxu0 %v88_v8 }
  0x18   :  { %26 = vsyncpa [#allocation5], 0  ;;  %v85_v11 = vld [vmem:[%s2425_s22 + $0x38] sm:$0xff]  ;;  %v84_v12 = vld [vmem:[%s2425_s22 + $0x30] sm:$0xff]  ;;  %v62_v19 = vlaneseq  ;;  %v1825_v22 = vmov 1.0   ;;  %s2426_s27 = sld [smem:[#allocation9_spill]] }
  0x19   :  { %102 = vmatpush.msra.mxu0 %v87_v9  ;;  %v83_v13 = vld [vmem:[%s2425_s22 + $0x28] sm:$0xff]  ;;  %v82_v14 = vld [vmem:[%s2425_s22 + $0x20] sm:$0xff]  ;;  %v81_v15 = vld [vmem:[%s2425_s22 + $0x18] sm:$0xff]  ;;  %vm119_vm2 = vcmask 261120   ;;  %v1826_v32 = vmov 32.0   ;;  %s2427_s0 = sld [smem:[#allocation11_spill]] }
  0x1a   :  { %v80_v16 = vld [vmem:[%s2425_s22 + $0x10] sm:$0xff]  ;;  %v79_v17 = vld [vmem:[%s2425_s22 + $0x8] sm:$0xff]  ;;  %v78_v18 = vld [vmem:[%s2425_s22] sm:$0xff]  ;;  %v1989_v20 = vand.u32 127, %v62_v19  ;;  %1702 = vrcp.f32 %v1826_v32  ;;  %s1827_s23 = smov 112   ;;  %vm241_vm10 = vcmask 130048  }
  0x1b   :  { %103 = vmatpush.msra.mxu0 %v86_v10  ;;  %v1640_v49 = vld [vmem:[%s2401_s5 + $0x8] sm:$0xff]  ;;  %v1643_v50 = vld [vmem:[%s2401_s5 + $0x18] sm:$0xff]  ;;  %v1639_v52 = vld [vmem:[%s2401_s5] sm:$0xff]  ;;  %s1829_s24 = smov 96   ;;  %s1831_s1 = smov 128  }
  0x1c   :  { %229 = vmatpush.bf16.msra.mxu1 %v1640_v49  ;;  %340 = vmatpush.bf16.msra.mxu3 %v1643_v50  ;;  %v1642_v53 = vld [vmem:[%s2401_s5 + $0x10] sm:$0xff]  ;;  %v129_v32 = vshra.s32 %v1989_v20, 3  ;;  %s1832_s2 = smov 8   ;;  %s1417_s25 = sshll.u32 %s2415_s19, 4  ;;  %s1418_s25 = int_to_ptr.hbm [resolvable:$true] %s1417_s25 }
  0x1d   :  { %104 = vmatpush.msra.mxu0 %v85_v11 }
  0x1e   :  { %v94_v24 = vld [vmem:[%s2426_s27] sm:$0xff]  ;;  %v95_v28 = vld [vmem:[%s2426_s27 + $0x8] sm:$0xff] }
  0x1f   :  { %105 = vmatpush.msra.mxu0 %v84_v12  ;;  %v1682_v8 = vld [vmem:[%s2427_s0] ss:$0 sm:$0xff] }
  0x20   :  { %v1703_v33 = vpop.eup %1702  ;;  %230 = vmatpush.bf16.msra.mxu1 %v1639_v52  ;;  %341 = vmatpush.bf16.msra.mxu3 %v1642_v53 }
  0x21   :  { %106 = vmatpush.msra.mxu0 %v83_v13  ;;  %v145_v34 = vmul.f32 32.0, %v1703_v33  ;;  %vm149_vm3 = vweird.f32 %v1703_v33  ;;  %v1683_v13 = vld [vmem:[%s2400_s4] ss:$0 sm:$0xff] }
  0x23   :  { %107 = vmatpush.msra.mxu0 %v82_v14  ;;  %v146_v35 = vsub.f32 1.0, %v145_v34 }
  0x25   :  { %108 = vmatpush.msra.mxu0 %v81_v15  ;;  %v147_v36 = vmul.f32 %v1703_v33, %v146_v35 }
  0x27   :  { %109 = vmatpush.msra.mxu0 %v80_v16  ;;  %v148_v37 = vadd.f32 %v1703_v33, %v147_v36  ;;  %v1828_v36 = vmov -1e+30  }
  0x29   :  { %110 = vmatpush.msra.mxu0 %v79_v17  ;;  %v2017_v38 = vsel %vm149_vm3, %v1703_v33, %v148_v37 }
  0x2b   :  { %111 = vmatpush.msra.mxu0 %v78_v18 }
  0x7e   :  { %v68_v21 = vpop.permute.xlu0 %67 }
  0x7f   :  { %vm72_vm0 = vcmp.eq.s32.totalorder %v1989_v20, %v68_v21  ;;  %v1684_v21 = vld [vmem:[%s2402_s6] ss:$0 sm:$0xff] }
  0x80   :  { %1438 = vmatmul.msk.f32.vlgmr.msra.gmra.mxu0 %vm72_vm0, %v1825_v22 }
  0x86   :  { %v71_v23 = vpop.permute.xlu0 %70 }
  0x87   :  { %vm73_vm1 = vcmp.eq.s32.totalorder %v1989_v20, %v71_v23 }
  0x88   :  { %1439 = vmatmul.msk.f32.gmra.mxu0 %vm73_vm1, %v1825_v22 }
  0xfd   :  { %v113_v25 = vpop.f32.mrf.mxu0 }
  0xfe   :  { %v1996_v26 = vadd.f32 %v113_v25, %v94_v24 }
 0x100   :  { %120 = vst.msk [vmem:[%s2413_s17] sm:$0xff] %vm119_vm2, %v1996_v26  ;;  %v138_v27 = vsel %vm119_vm2, %v1996_v26, 0.0 }
 0x101   :  { %139 = vadd.xlane.f32.xlu1 %v138_v27 }
 0x105   :  { %v116_v29 = vpop.f32.mrf.mxu0 }
 0x106   :  { %v2008_v30 = vadd.f32 %v116_v29, %v95_v28  ;;  %v123_v29 = vshrl.u32 %v62_v19, 7 }
 0x108   :  { %121 = vst.msk [vmem:[%s2413_s17 + $0x8] sm:$0xff] %vm119_vm2, %v2008_v30  ;;  %v141_v31 = vsel %vm119_vm2, %v2008_v30, 0.0  ;;  %vm125_vm11 = vcmp.le.s32.totalorder %v1989_v20, %v123_v29  ;;  %v124_v33 = vadd.s32 8, %v123_v29 }
 0x109   :  { %142 = vadd.xlane.f32.xlu1 %v141_v31  ;;  %v127_v31 = vshra.s32 %v123_v29, 3 }
 0x10a   :  { %v128_v34 = vshra.s32 %v124_v33, 3  ;;  %vm126_vm14 = vcmp.le.s32.totalorder %v1989_v20, %v124_v33 }
 0x10b   :  { %vm130_vm12 = vcmp.eq.s32.totalorder %v127_v31, %v129_v32 }
 0x10c   :  { %vm132_vm13 = vmand %vm125_vm11, %vm130_vm12  ;;  %vm131_vm15 = vcmp.eq.s32.totalorder %v128_v34, %v129_v32 }
 0x10d   :  { %v2056_v37 = vsel %vm132_vm13, 0.0, %v1828_v36  ;;  %vm133_vm0 = vmand %vm126_vm14, %vm131_vm15 }
 0x174   :  { %v140_v39 = vpop.xlane.xlu1 %139 }
 0x175   :  { %v151_v40 = vmul.f32 %v2017_v38, %v140_v39 }
 0x177   :  { %v153_v41 = vsub.f32 %v1996_v26, %v151_v40 }
 0x179   :  { %v155_v42 = vmul.f32 %v153_v41, %v153_v41 }
 0x17b   :  { %v157_v43 = vsel %vm119_vm2, %v155_v42, 0.0  ;;  %v2061_v42 = vsel %vm133_vm0, 0.0, %v1828_v36 }
 0x17c   :  { %158 = vadd.xlane.f32.xlu2 %v157_v43  ;;  %v143_v44 = vpop.xlane.xlu1 %142 }
 0x17d   :  { %v152_v45 = vmul.f32 %v2017_v38, %v143_v44 }
 0x17f   :  { %v154_v46 = vsub.f32 %v2008_v30, %v152_v45 }
 0x181   :  { %v156_v47 = vmul.f32 %v154_v46, %v154_v46 }
 0x183   :  { %v160_v48 = vsel %vm119_vm2, %v156_v47, 0.0 }
 0x184   :  { %161 = vadd.xlane.f32.xlu2 %v160_v48 }
 0x1ef   :  { %v159_v51 = vpop.xlane.xlu2 %158 }
 0x1f0   :  { %v163_v54 = vmul.f32 %v159_v51, %v2017_v38 }
 0x1f2   :  { %v165_v55 = vadd.f32 1e-05, %v163_v54 }
 0x1f4   :  { %1704 = vrsqrt.f32 %v165_v55  ;;  %vm173_vm5 = vweird.f32 %v165_v55 }
 0x1f7   :  { %v162_v56 = vpop.xlane.xlu2 %161 }
 0x1f8   :  { %v164_v57 = vmul.f32 %v162_v56, %v2017_v38 }
 0x1fa   :  { %v1705_v58 = vpop.eup %1704  ;;  %v166_v59 = vadd.f32 1e-05, %v164_v57 }
 0x1fb   :  { %v168_v60 = vmul.f32 %v1705_v58, %v165_v55  ;;  %vm174_vm4 = vweird.f32 %v1705_v58 }
 0x1fc   :  { %1706 = vrsqrt.f32 %v166_v59  ;;  %vm175_vm6 = vmor %vm173_vm5, %vm174_vm4  ;;  %vm183_vm8 = vweird.f32 %v166_v59 }
 0x1fd   :  { %v169_v61 = vmul.f32 %v1705_v58, %v168_v60 }
 0x1ff   :  { %v170_v62 = vmul.f32 0.5, %v169_v61 }
 0x201   :  { %v171_v63 = vsub.f32 1.5, %v170_v62 }
 0x202   :  { %v1707_v0 = vpop.eup %1706 }
 0x203   :  { %v172_v1 = vmul.f32 %v1705_v58, %v171_v63  ;;  %v178_v2 = vmul.f32 %v1707_v0, %v166_v59  ;;  %vm184_vm7 = vweird.f32 %v1707_v0 }
 0x204   :  { %vm185_vm9 = vmor %vm183_vm8, %vm184_vm7 }
 0x205   :  { %v179_v3 = vmul.f32 %v1707_v0, %v178_v2  ;;  %v176_v4 = vsel %vm175_vm6, %v1705_v58, %v172_v1  ;;  %v1685_v58 = vld [vmem:[%s2402_s6 + $0x1] ss:$0 sm:$0xff] }
 0x206   :  { %v187_v7 = vmul.f32 %v176_v4, %v153_v41 }
 0x207   :  { %v180_v5 = vmul.f32 0.5, %v179_v3 }
 0x208   :  { %v192_v12 = vmul.f32 %v1682_v8, %v187_v7  ;;  %v1641_v7 = vld [vmem:[%s2403_s7] sm:$0xff] }
 0x209   :  { %v181_v6 = vsub.f32 1.5, %v180_v5 }
 0x20a   :  { %v197_v15 = vadd.f32 %v1683_v13, %v192_v12 }
 0x20b   :  { %v182_v9 = vmul.f32 %v1707_v0, %v181_v6 }
 0x20d   :  { %v186_v10 = vsel %vm185_vm9, %v1707_v0, %v182_v9 }
 0x20e   :  { %v188_v11 = vmul.f32 %v186_v10, %v154_v46 }
 0x210   :  { %v193_v14 = vmul.f32 %v1682_v8, %v188_v11 }
 0x212   :  { %v198_v16 = vadd.f32 %v1683_v13, %v193_v14 }
 0x214   :  { %v199_v17 = vpack.c.bf16 %v198_v16, %v197_v15 }
 0x216   :  { %1448 = vmatmul.msk.bf16.vlgmr.msra.gmra.mxu1 %vm119_vm2, %v199_v17  ;;  %1464 = vmatmul.msk.bf16.vlgmr.msra.gmra.mxu3 %vm119_vm2, %v199_v17 }
 0x293   :  { %v232_v18 = vpop.f32.mrf.mxu1 }
 0x294   :  { %v233_v23 = vadd.f32 %v1684_v21, %v232_v18 }
 0x299   :  { %v343_v56 = vpop.f32.mrf.mxu3 }
 0x29a   :  { %v344_v60 = vadd.f32 %v1685_v58, %v343_v56 }
 0x29b   :  { %v234_v22 = vpop.f32.mrf.mxu1 }
 0x29c   :  { %v235_v24 = vadd.f32 %v1684_v21, %v234_v22 }
 0x29e   :  { %v237_v25 = vpack.c.bf16 %v235_v24, %v233_v23 }
 0x2a0   :  { %239 = vrot.lane.b32.xlu0 %v237_v25, %s1827_s23 }
 0x2a1   :  { %v345_v57 = vpop.f32.mrf.mxu3 }
 0x2a2   :  { %v346_v59 = vadd.f32 %v1685_v58, %v345_v57 }
 0x2a4   :  { %v348_v61 = vpack.c.bf16 %v346_v59, %v344_v60 }
 0x312   :  { %v240_v27 = vpop.permute.xlu0 %239 }
 0x313   :  { %v246_v28 = vsel %vm241_vm10, %v240_v27, 0 }
 0x314   :  { %255 = vmatpush.bf16.xpose.msra.mxu2 %v246_v28 }
 0x31b   :  { %1449 = vmatmul.msk.bf16.vlgmr.msra.gmra.mxu2 %vm241_vm10, %v237_v25 }
 0x39e   :  { %v257_v35 = vpop.f32.mrf.mxu2 }
 0x39f   :  { %v262_v39 = vmul.f32 0.25, %v257_v35 }
 0x3a1   :  { %v264_v40 = vadd.f32 %v262_v39, %v2056_v37 }
 0x3a3   :  { %v266_v19 = vsel %vm241_vm10, %v264_v40, -inf }
 0x3a4   :  { %267 = vmax.xlane.f32.xlu1 %v266_v19 }
 0x3a6   :  { %v259_v41 = vpop.f32.mrf.mxu2 }
 0x3a7   :  { %v263_v43 = vmul.f32 0.25, %v259_v41 }
 0x3a9   :  { %v265_v44 = vadd.f32 %v263_v43, %v2061_v42  ;;  %v1644_v43 = vld [vmem:[%s2403_s7 + $0x8] sm:$0xff] }
 0x3aa   :  { %439 = vmatpush.bf16.msrb.mxu3 %v1644_v43  ;;  %v1651_v43 = vld [vmem:[%s2409_s13 + $0x20] sm:$0xff] }
 0x3ab   :  { %v269_v45 = vsel %vm241_vm10, %v265_v44, -inf }
 0x3ac   :  { %270 = vmax.xlane.f32.xlu2 %v269_v45 }
 0x3c4   :  { %289 = vrot.lane.b32.xlu2 %v237_v25, %s1829_s24 }
 0x417   :  { %v268_v20 = vpop.xlane.xlu1 %267 }
 0x418   :  { %v272_v46 = vsub.f32 %v264_v40, %v268_v20 }
 0x41a   :  { %v274_v47 = vmul.f32 1.442695, %v272_v46 }
 0x41c   :  { %1708 = vpow2.f32 %v274_v47 }
 0x41f   :  { %v271_v48 = vpop.xlane.xlu2 %270 }
 0x420   :  { %v273_v49 = vsub.f32 %v265_v44, %v271_v48 }
 0x422   :  { %v1709_v50 = vpop.eup %1708  ;;  %v276_v51 = vmul.f32 1.442695, %v273_v49  ;;  %v1686_v49 = vld [vmem:[%s2404_s8] ss:$0 sm:$0xff] }
 0x423   :  { %v278_v52 = vsel %vm241_vm10, %v1709_v50, 0.0 }
 0x424   :  { %1710 = vpow2.f32 %v276_v51  ;;  %279 = vadd.xlane.f32.xlu0 %v278_v52 }
 0x427   :  { %v290_v53 = vpop.permute.xlu2 %289 }
 0x428   :  { %302 = vmatpush.bf16.msrb.mxu1 %v290_v53 }
 0x42a   :  { %v1711_v54 = vpop.eup %1710 }
 0x42b   :  { %v281_v55 = vsel %vm241_vm10, %v1711_v54, 0.0 }
 0x42c   :  { %282 = vadd.xlane.f32.xlu1 %v281_v55 }
 0x445   :  { %350 = vrot.lane.b32.xlu1 %v348_v61, %s1827_s23 }
 0x497   :  { %v280_v62 = vpop.xlane.xlu0 %279 }
 0x498   :  { %1712 = vrcp.f32 %v280_v62 }
 0x49e   :  { %v1713_v0 = vpop.eup %1712 }
 0x49f   :  { %v283_v63 = vpop.xlane.xlu1 %282  ;;  %v286_v2 = vmul.f32 %v1713_v0, %v1709_v50 }
 0x4a0   :  { %1714 = vrcp.f32 %v283_v63 }
 0x4a6   :  { %v1715_v1 = vpop.eup %1714 }
 0x4a7   :  { %v287_v3 = vmul.f32 %v1715_v1, %v1711_v54 }
 0x4a9   :  { %v288_v4 = vpack.c.bf16 %v287_v3, %v286_v2  ;;  %v1646_v3 = vld [vmem:[%s2407_s11 + $0x8] sm:$0xff] }
 0x4ab   :  { %1450 = vmatmul.msk.bf16.vlgmr.msrb.gmra.mxu1 %vm241_vm10, %v288_v4 }
 0x4b7   :  { %v351_v5 = vpop.permute.xlu1 %350 }
 0x4b8   :  { %v356_v6 = vsel %vm241_vm10, %v351_v5, 0 }
 0x4b9   :  { %365 = vmatpush.bf16.xpose.msra.mxu1 %v356_v6  ;;  %v1645_v6 = vld [vmem:[%s2407_s11] sm:$0xff] }
 0x4c0   :  { %1465 = vmatmul.msk.bf16.vlgmr.msra.gmra.mxu1 %vm241_vm10, %v348_v61 }
 0x4c1   :  { %462 = vmatpush.bf16.msrb.mxu1 %v1641_v7 }
 0x528   :  { %v304_v8 = vpop.f32.mrf.mxu1 }
 0x530   :  { %v306_v9 = vpop.f32.mrf.mxu1 }
 0x531   :  { %v309_v10 = vpack.c.bf16 %v306_v9, %v304_v8 }
 0x533   :  { %1478 = vmatmul.msk.bf16.vlgmr.msrb.gmra.mxu1 %vm241_vm10, %v309_v10 }
 0x53d   :  { %v367_v11 = vpop.f32.mrf.mxu1 }
 0x53e   :  { %v372_v12 = vmul.f32 0.25, %v367_v11 }
 0x540   :  { %v374_v13 = vadd.f32 %v372_v12, %v2056_v37 }
 0x542   :  { %v376_v14 = vsel %vm241_vm10, %v374_v13, -inf }
 0x543   :  { %377 = vmax.xlane.f32.xlu2 %v376_v14 }
 0x545   :  { %v369_v15 = vpop.f32.mrf.mxu1 }
 0x546   :  { %v373_v16 = vmul.f32 0.25, %v369_v15 }
 0x548   :  { %v375_v17 = vadd.f32 %v373_v16, %v2061_v42 }
 0x54a   :  { %v379_v18 = vsel %vm241_vm10, %v375_v17, -inf }
 0x54b   :  { %380 = vmax.xlane.f32.xlu1 %v379_v18 }
 0x5b0   :  { %v464_v46 = vpop.f32.mrf.mxu1 }
 0x5b6   :  { %v378_v21 = vpop.xlane.xlu2 %377 }
 0x5b7   :  { %v382_v22 = vsub.f32 %v374_v13, %v378_v21 }
 0x5b8   :  { %v466_v53 = vpop.f32.mrf.mxu1 }
 0x5b9   :  { %v384_v23 = vmul.f32 1.442695, %v382_v22 }
 0x5bb   :  { %1716 = vpow2.f32 %v384_v23 }
 0x5be   :  { %v381_v24 = vpop.xlane.xlu1 %380 }
 0x5bf   :  { %v383_v25 = vsub.f32 %v375_v17, %v381_v24 }
 0x5c1   :  { %v1717_v27 = vpop.eup %1716  ;;  %v386_v28 = vmul.f32 1.442695, %v383_v25  ;;  %v1687_v25 = vld [vmem:[%s2405_s9] ss:$0 sm:$0xff] }
 0x5c2   :  { %v388_v29 = vsel %vm241_vm10, %v1717_v27, 0.0 }
 0x5c3   :  { %1718 = vpow2.f32 %v386_v28  ;;  %389 = vadd.xlane.f32.xlu0 %v388_v29 }
 0x5c9   :  { %v1719_v31 = vpop.eup %1718 }
 0x5ca   :  { %v391_v32 = vsel %vm241_vm10, %v1719_v31, 0.0 }
 0x5cb   :  { %392 = vadd.xlane.f32.xlu0 %v391_v32 }
 0x5df   :  { %399 = vrot.lane.b32.xlu0 %v348_v61, %s1829_s24 }
 0x636   :  { %v390_v33 = vpop.xlane.xlu0 %389 }
 0x63e   :  { %v393_v34 = vpop.xlane.xlu0 %392 }
 0x63f   :  { %1720 = vrcp.f32 %v393_v34 }
 0x640   :  { %1722 = vrcp.f32 %v390_v33 }
 0x645   :  { %v1721_v35 = vpop.eup %1720 }
 0x646   :  { %v1723_v36 = vpop.eup %1722  ;;  %v397_v39 = vmul.f32 %v1721_v35, %v1719_v31  ;;  %v1688_v31 = vld [vmem:[%s2406_s10] ss:$0 sm:$0xff] }
 0x647   :  { %v396_v40 = vmul.f32 %v1723_v36, %v1717_v27 }
 0x649   :  { %v398_v41 = vpack.c.bf16 %v397_v39, %v396_v40  ;;  %v1654_v40 = vld [vmem:[%s2409_s13 + $0x38] sm:$0xff] }
 0x64a   :  { %654 = vmatpush.bf16.msra.mxu3 %v1654_v40 }
 0x651   :  { %v400_v19 = vpop.permute.xlu0 %399 }
 0x652   :  { %412 = vmatpush.bf16.msrb.mxu2 %v400_v19  ;;  %v1653_v19 = vld [vmem:[%s2409_s13 + $0x30] sm:$0xff] }
 0x653   :  { %655 = vmatpush.bf16.msra.mxu3 %v1653_v19 }
 0x655   :  { %1466 = vmatmul.msk.bf16.vlgmr.msrb.gmra.mxu2 %vm241_vm10, %v398_v41  ;;  %v1652_v41 = vld [vmem:[%s2409_s13 + $0x28] sm:$0xff] }
 0x656   :  { %563 = vmatpush.bf16.msra.mxu2 %v1646_v3 }
 0x657   :  { %656 = vmatpush.bf16.msra.mxu3 %v1652_v41 }
 0x65a   :  { %564 = vmatpush.bf16.msra.mxu2 %v1645_v6 }
 0x65b   :  { %657 = vmatpush.bf16.msra.mxu3 %v1651_v43 }
 0x6d8   :  { %v414_v44 = vpop.f32.mrf.mxu2 }
 0x6e0   :  { %v416_v45 = vpop.f32.mrf.mxu2 }
 0x6e1   :  { %v419_v20 = vpack.c.bf16 %v416_v45, %v414_v44  ;;  %v1650_v44 = vld [vmem:[%s2409_s13 + $0x18] sm:$0xff]  ;;  %v1649_v45 = vld [vmem:[%s2409_s13 + $0x10] sm:$0xff] }
 0x6e2   :  { %658 = vmatpush.bf16.msra.mxu3 %v1650_v44 }
 0x6e3   :  { %1473 = vmatmul.msk.bf16.vlgmr.msrb.gmra.mxu3 %vm241_vm10, %v419_v20  ;;  %v1648_v20 = vld [vmem:[%s2409_s13 + $0x8] sm:$0xff] }
 0x6e6   :  { %659 = vmatpush.bf16.msra.mxu3 %v1649_v45 }
 0x6ea   :  { %660 = vmatpush.bf16.msra.mxu3 %v1648_v20 }
 0x766   :  { %v441_v47 = vpop.f32.mrf.mxu3 }
 0x767   :  { %v465_v48 = vadd.f32 %v464_v46, %v441_v47  ;;  %v1647_v46 = vld [vmem:[%s2409_s13] sm:$0xff] }
 0x768   :  { %v1689_v47 = vld [vmem:[%s2408_s12] ss:$0 sm:$0xff]  ;;  %661 = vmatpush.bf16.msra.mxu3 %v1647_v46 }
 0x769   :  { %v469_v50 = vadd.f32 %v465_v48, %v1996_v26 }
 0x76b   :  { %v2095_v51 = vadd.f32 %v1686_v49, %v469_v50 }
 0x76d   :  { %v479_v52 = vsel %vm119_vm2, %v2095_v51, 0.0 }
 0x76e   :  { %v443_v54 = vpop.f32.mrf.mxu3  ;;  %480 = vadd.xlane.f32.xlu2 %v479_v52 }
 0x76f   :  { %v467_v55 = vadd.f32 %v466_v53, %v443_v54 }
 0x771   :  { %v470_v56 = vadd.f32 %v467_v55, %v2008_v30 }
 0x773   :  { %v2100_v57 = vadd.f32 %v1686_v49, %v470_v56 }
 0x775   :  { %v482_v58 = vsel %vm119_vm2, %v2100_v57, 0.0 }
 0x776   :  { %483 = vadd.xlane.f32.xlu2 %v482_v58 }
 0x7e1   :  { %v481_v59 = vpop.xlane.xlu2 %480 }
 0x7e2   :  { %v485_v26 = vmul.f32 %v481_v59, %v2017_v38 }
 0x7e4   :  { %v487_v60 = vsub.f32 %v2095_v51, %v485_v26 }
 0x7e6   :  { %v489_v61 = vmul.f32 %v487_v60, %v487_v60 }
 0x7e8   :  { %v491_v62 = vsel %vm119_vm2, %v489_v61, 0.0 }
 0x7e9   :  { %492 = vadd.xlane.f32.xlu1 %v491_v62  ;;  %v484_v63 = vpop.xlane.xlu2 %483 }
 0x7ea   :  { %v486_v0 = vmul.f32 %v484_v63, %v2017_v38 }
 0x7ec   :  { %v488_v30 = vsub.f32 %v2100_v57, %v486_v0 }
 0x7ee   :  { %v490_v1 = vmul.f32 %v488_v30, %v488_v30 }
 0x7f0   :  { %v494_v2 = vsel %vm119_vm2, %v490_v1, 0.0 }
 0x7f1   :  { %495 = vadd.xlane.f32.xlu0 %v494_v2 }
 0x85c   :  { %v493_v4 = vpop.xlane.xlu1 %492 }
 0x85d   :  { %v497_v5 = vmul.f32 %v493_v4, %v2017_v38 }
 0x85f   :  { %v499_v7 = vadd.f32 1e-05, %v497_v5 }
 0x861   :  { %1724 = vrsqrt.f32 %v499_v7  ;;  %vm507_vm3 = vweird.f32 %v499_v7 }
 0x864   :  { %v496_v8 = vpop.xlane.xlu0 %495 }
 0x865   :  { %v498_v9 = vmul.f32 %v496_v8, %v2017_v38 }
 0x867   :  { %v1725_v10 = vpop.eup %1724  ;;  %v500_v11 = vadd.f32 1e-05, %v498_v9 }
 0x868   :  { %v502_v12 = vmul.f32 %v1725_v10, %v499_v7  ;;  %vm508_vm1 = vweird.f32 %v1725_v10  ;;  %v1690_v7 = vld [vmem:[%s2410_s14] ss:$0 sm:$0xff] }
 0x869   :  { %1726 = vrsqrt.f32 %v500_v11  ;;  %vm509_vm4 = vmor %vm507_vm3, %vm508_vm1  ;;  %vm517_vm6 = vweird.f32 %v500_v11 }
 0x86a   :  { %v503_v13 = vmul.f32 %v1725_v10, %v502_v12 }
 0x86c   :  { %v504_v14 = vmul.f32 0.5, %v503_v13 }
 0x86e   :  { %v505_v15 = vsub.f32 1.5, %v504_v14 }
 0x86f   :  { %v1727_v16 = vpop.eup %1726 }
 0x870   :  { %v506_v17 = vmul.f32 %v1725_v10, %v505_v15  ;;  %v512_v18 = vmul.f32 %v1727_v16, %v500_v11  ;;  %vm518_vm5 = vweird.f32 %v1727_v16 }
 0x871   :  { %vm519_vm7 = vmor %vm517_vm6, %vm518_vm5 }
 0x872   :  { %v513_v21 = vmul.f32 %v1727_v16, %v512_v18  ;;  %v510_v22 = vsel %vm509_vm4, %v1725_v10, %v506_v17 }
 0x873   :  { %v521_v27 = vmul.f32 %v510_v22, %v487_v60 }
 0x874   :  { %v514_v23 = vmul.f32 0.5, %v513_v21 }
 0x875   :  { %v526_v32 = vmul.f32 %v1687_v25, %v521_v27  ;;  %v1656_v27 = vld [vmem:[%s2401_s5 + $0x28] sm:$0xff] }
 0x876   :  { %v515_v24 = vsub.f32 1.5, %v514_v23  ;;  %769 = vmatpush.bf16.msrb.mxu3 %v1656_v27 }
 0x877   :  { %v531_v35 = vadd.f32 %v1688_v31, %v526_v32 }
 0x878   :  { %v516_v28 = vmul.f32 %v1727_v16, %v515_v24 }
 0x87a   :  { %v520_v29 = vsel %vm519_vm7, %v1727_v16, %v516_v28 }
 0x87b   :  { %v522_v33 = vmul.f32 %v520_v29, %v488_v30 }
 0x87d   :  { %v527_v34 = vmul.f32 %v1687_v25, %v522_v33  ;;  %v1659_v33 = vld [vmem:[%s2401_s5 + $0x38] sm:$0xff] }
 0x87f   :  { %v532_v36 = vadd.f32 %v1688_v31, %v527_v34  ;;  %v1655_v31 = vld [vmem:[%s2401_s5 + $0x20] sm:$0xff] }
 0x880   :  { %770 = vmatpush.bf16.msrb.mxu3 %v1655_v31 }
 0x881   :  { %v533_v39 = vpack.c.bf16 %v532_v36, %v531_v35  ;;  %v1658_v36 = vld [vmem:[%s2401_s5 + $0x30] sm:$0xff] }
 0x883   :  { %1487 = vmatmul.msk.bf16.vlgmr.msra.gmra.mxu2 %vm119_vm2, %v533_v39 }
 0x906   :  { %v566_v48 = vpop.f32.mrf.mxu2 }
 0x907   :  { %v567_v49 = vadd.f32 %v1689_v47, %v566_v48 }
 0x909   :  { %v573_v50 = vmul.f32 0.044715, %v567_v49  ;;  %v571_v1 = vmul.f32 0.5, %v567_v49 }
 0x90b   :  { %v575_v52 = vmul.f32 %v573_v50, %v567_v49 }
 0x90d   :  { %v577_v53 = vmul.f32 %v575_v52, %v567_v49  ;;  %v1691_v52 = vld [vmem:[%s2427_s0 + $0x1] ss:$0 sm:$0xff] }
 0x90e   :  { %v568_v54 = vpop.f32.mrf.mxu2 }
 0x90f   :  { %v579_v55 = vadd.f32 %v577_v53, %v567_v49  ;;  %v569_v56 = vadd.f32 %v1689_v47, %v568_v54 }
 0x911   :  { %v574_v58 = vmul.f32 0.044715, %v569_v56  ;;  %v581_v59 = vmul.f32 0.7978846, %v579_v55  ;;  %v572_v2 = vmul.f32 0.5, %v569_v56 }
 0x913   :  { %v576_v26 = vmul.f32 %v574_v58, %v569_v56  ;;  %1728 = vtanh.f32 %v581_v59 }
 0x915   :  { %v578_v60 = vmul.f32 %v576_v26, %v569_v56 }
 0x917   :  { %v580_v61 = vadd.f32 %v578_v60, %v569_v56  ;;  %v1692_v56 = vld [vmem:[%s2400_s4 + $0x1] ss:$0 sm:$0xff] }
 0x919   :  { %v582_v62 = vmul.f32 0.7978846, %v580_v61  ;;  %v1729_v63 = vpop.eup %1728 }
 0x91a   :  { %v585_v0 = vadd.f32 1.0, %v1729_v63 }
 0x91b   :  { %1730 = vtanh.f32 %v582_v62 }
 0x91c   :  { %v587_v4 = vmul.f32 %v585_v0, %v571_v1  ;;  %v1693_v0 = vld [vmem:[%s2402_s6 + $0x2] ss:$0 sm:$0xff] }
 0x921   :  { %v1731_v30 = vpop.eup %1730 }
 0x922   :  { %v586_v3 = vadd.f32 1.0, %v1731_v30 }
 0x924   :  { %v588_v5 = vmul.f32 %v586_v3, %v572_v2 }
 0x926   :  { %v589_v6 = vpack.c.bf16 %v588_v5, %v587_v4  ;;  %v1694_v5 = vld [vmem:[%s2402_s6 + $0x3] ss:$0 sm:$0xff] }
 0x928   :  { %662 = vmatmul.bf16.vlgmr.msra.gmra.mxu3 %v589_v6 }
 0x929   :  { %880 = vmatpush.bf16.msra.mxu3 %v1659_v33 }
 0x92d   :  { %881 = vmatpush.bf16.msra.mxu3 %v1658_v36 }
 0x9ab   :  { %v663_v8 = vpop.f32.mrf.mxu3 }
 0x9ac   :  { %v668_v9 = vadd.f32 %v663_v8, %v2095_v51 }
 0x9ae   :  { %v2156_v10 = vadd.f32 %v1690_v7, %v668_v9 }
 0x9b0   :  { %1520 = vst.msk [vmem:[%s2413_s17 + $0x10] sm:$0xff] %vm119_vm2, %v2156_v10  ;;  %v683_v11 = vsel %vm119_vm2, %v2156_v10, 0.0 }
 0x9b1   :  { %684 = vadd.xlane.f32.xlu2 %v683_v11 }
 0x9b3   :  { %v665_v12 = vpop.f32.mrf.mxu3 }
 0x9b4   :  { %v669_v13 = vadd.f32 %v665_v12, %v2100_v57 }
 0x9b6   :  { %v2166_v14 = vadd.f32 %v1690_v7, %v669_v13 }
 0x9b8   :  { %1521 = vst.msk [vmem:[%s2413_s17 + $0x18] sm:$0xff] %vm119_vm2, %v2166_v14  ;;  %v686_v51 = vsel %vm119_vm2, %v2166_v14, 0.0 }
 0x9b9   :  { %687 = vadd.xlane.f32.xlu1 %v686_v51 }
 0xa24   :  { %v685_v15 = vpop.xlane.xlu2 %684 }
 0xa25   :  { %v689_v16 = vmul.f32 %v685_v15, %v2017_v38 }
 0xa27   :  { %v691_v17 = vsub.f32 %v2156_v10, %v689_v16 }
 0xa29   :  { %v693_v18 = vmul.f32 %v691_v17, %v691_v17 }
 0xa2b   :  { %v695_v57 = vsel %vm119_vm2, %v693_v18, 0.0 }
 0xa2c   :  { %696 = vadd.xlane.f32.xlu2 %v695_v57  ;;  %v688_v21 = vpop.xlane.xlu1 %687 }
 0xa2d   :  { %v690_v22 = vmul.f32 %v688_v21, %v2017_v38 }
 0xa2f   :  { %v692_v23 = vsub.f32 %v2166_v14, %v690_v22 }
 0xa31   :  { %v694_v24 = vmul.f32 %v692_v23, %v692_v23 }
 0xa33   :  { %v698_v25 = vsel %vm119_vm2, %v694_v24, 0.0 }
 0xa34   :  { %699 = vadd.xlane.f32.xlu1 %v698_v25 }
 0xa9f   :  { %v697_v28 = vpop.xlane.xlu2 %696 }
 0xaa0   :  { %v701_v29 = vmul.f32 %v697_v28, %v2017_v38 }
 0xaa2   :  { %v703_v32 = vadd.f32 1e-05, %v701_v29 }
 0xaa4   :  { %1732 = vrsqrt.f32 %v703_v32  ;;  %vm711_vm9 = vweird.f32 %v703_v32 }
 0xaa7   :  { %v700_v34 = vpop.xlane.xlu1 %699 }
 0xaa8   :  { %v702_v35 = vmul.f32 %v700_v34, %v2017_v38 }
 0xaaa   :  { %v1733_v39 = vpop.eup %1732  ;;  %v704_v40 = vadd.f32 1e-05, %v702_v35 }
 0xaab   :  { %v706_v19 = vmul.f32 %v1733_v39, %v703_v32  ;;  %vm712_vm8 = vweird.f32 %v1733_v39 }
 0xaac   :  { %1734 = vrsqrt.f32 %v704_v40  ;;  %vm713_vm11 = vmor %vm711_vm9, %vm712_vm8  ;;  %vm721_vm13 = vweird.f32 %v704_v40 }
 0xaad   :  { %v707_v41 = vmul.f32 %v1733_v39, %v706_v19 }
 0xaaf   :  { %v708_v43 = vmul.f32 0.5, %v707_v41 }
 0xab1   :  { %v709_v44 = vsub.f32 1.5, %v708_v43 }
 0xab2   :  { %v1735_v45 = vpop.eup %1734 }
 0xab3   :  { %v710_v20 = vmul.f32 %v1733_v39, %v709_v44  ;;  %v716_v46 = vmul.f32 %v1735_v45, %v704_v40  ;;  %vm722_vm12 = vweird.f32 %v1735_v45 }
 0xab4   :  { %vm723_vm14 = vmor %vm721_vm13, %vm722_vm12 }
 0xab5   :  { %v717_v47 = vmul.f32 %v1735_v45, %v716_v46  ;;  %v714_v48 = vsel %vm713_vm11, %v1733_v39, %v710_v20 }
 0xab6   :  { %v725_v53 = vmul.f32 %v714_v48, %v691_v17 }
 0xab7   :  { %v718_v49 = vmul.f32 0.5, %v717_v47 }
 0xab8   :  { %v730_v58 = vmul.f32 %v1691_v52, %v725_v53 }
 0xab9   :  { %v719_v50 = vsub.f32 1.5, %v718_v49 }
 0xaba   :  { %v735_v60 = vadd.f32 %v1692_v56, %v730_v58 }
 0xabb   :  { %v720_v54 = vmul.f32 %v1735_v45, %v719_v50 }
 0xabd   :  { %v724_v55 = vsel %vm723_vm14, %v1735_v45, %v720_v54 }
 0xabe   :  { %v726_v59 = vmul.f32 %v724_v55, %v692_v23 }
 0xac0   :  { %v731_v26 = vmul.f32 %v1691_v52, %v726_v59 }
 0xac2   :  { %v736_v61 = vadd.f32 %v1692_v56, %v731_v26 }
 0xac4   :  { %v737_v62 = vpack.c.bf16 %v736_v61, %v735_v60 }
 0xac6   :  { %1537 = vmatmul.msk.bf16.vlgmr.msrb.gmra.mxu3 %vm119_vm2, %v737_v62 }
 0xad6   :  { %1555 = vmatmul.msk.bf16.vlgmr.msra.gmra.mxu3 %vm119_vm2, %v737_v62 }
 0xb49   :  { %v772_v63 = vpop.f32.mrf.mxu3 }
 0xb4a   :  { %v773_v1 = vadd.f32 %v1693_v0, %v772_v63 }
 0xb51   :  { %v774_v30 = vpop.f32.mrf.mxu3 }
 0xb52   :  { %v775_v2 = vadd.f32 %v1693_v0, %v774_v30 }
 0xb54   :  { %v777_v3 = vpack.c.bf16 %v775_v2, %v773_v1 }
 0xb56   :  { %779 = vrot.lane.b32.xlu2 %v777_v3, %s1827_s23 }
 0xb59   :  { %v883_v4 = vpop.f32.mrf.mxu3 }
 0xb5a   :  { %v884_v7 = vadd.f32 %v1694_v5, %v883_v4 }
 0xb61   :  { %v885_v6 = vpop.f32.mrf.mxu3 }
 0xb62   :  { %v886_v8 = vadd.f32 %v1694_v5, %v885_v6  ;;  %v1657_v5 = vld [vmem:[%s2403_s7 + $0x10] sm:$0xff] }
 0xb63   :  { %1002 = vmatpush.bf16.msrb.mxu3 %v1657_v5  ;;  %v1669_v5 = vld [vmem:[%s2409_s13 + $0x70] sm:$0xff] }
 0xb64   :  { %v888_v9 = vpack.c.bf16 %v886_v8, %v884_v7  ;;  %v1660_v7 = vld [vmem:[%s2403_s7 + $0x18] sm:$0xff] }
 0xb65   :  { %979 = vmatpush.bf16.msrb.mxu0 %v1660_v7  ;;  %v1667_v7 = vld [vmem:[%s2409_s13 + $0x60] sm:$0xff] }
 0xb66   :  { %890 = vrot.lane.b32.xlu1 %v888_v9, %s1827_s23 }
 0xbb0   :  { %v780_v11 = vpop.permute.xlu2 %779 }
 0xbb1   :  { %v785_v12 = vsel %vm241_vm10, %v780_v11, 0 }
 0xbb2   :  { %794 = vmatpush.bf16.xpose.msra.mxu1 %v785_v12 }
 0xbb9   :  { %1538 = vmatmul.msk.bf16.vlgmr.msra.gmra.mxu1 %vm241_vm10, %v777_v3 }
 0xbd8   :  { %v891_v13 = vpop.permute.xlu1 %890 }
 0xbd9   :  { %v896_v51 = vsel %vm241_vm10, %v891_v13, 0 }
 0xbda   :  { %905 = vmatpush.bf16.xpose.msrb.mxu1 %v896_v51 }
 0xbe1   :  { %1556 = vmatmul.msk.bf16.vlgmr.msrb.gmra.mxu1 %vm241_vm10, %v888_v9 }
 0xc36   :  { %v796_v15 = vpop.f32.mrf.mxu1 }
 0xc37   :  { %v801_v16 = vmul.f32 0.25, %v796_v15 }
 0xc39   :  { %v803_v17 = vadd.f32 %v801_v16, %v2056_v37 }
 0xc3b   :  { %v805_v18 = vsel %vm241_vm10, %v803_v17, -inf }
 0xc3c   :  { %806 = vmax.xlane.f32.xlu0 %v805_v18 }
 0xc3e   :  { %v798_v57 = vpop.f32.mrf.mxu1 }
 0xc3f   :  { %v802_v21 = vmul.f32 0.25, %v798_v57 }
 0xc41   :  { %v804_v22 = vadd.f32 %v802_v21, %v2061_v42 }
 0xc43   :  { %v808_v23 = vsel %vm241_vm10, %v804_v22, -inf }
 0xc44   :  { %809 = vmax.xlane.f32.xlu2 %v808_v23 }
 0xc5e   :  { %v907_v24 = vpop.f32.mrf.mxu1 }
 0xc5f   :  { %v912_v25 = vmul.f32 0.25, %v907_v24 }
 0xc61   :  { %v914_v27 = vadd.f32 %v912_v25, %v2056_v37 }
 0xc63   :  { %v916_v28 = vsel %vm241_vm10, %v914_v27, -inf }
 0xc64   :  { %917 = vmax.xlane.f32.xlu1 %v916_v28 }
 0xc66   :  { %v909_v29 = vpop.f32.mrf.mxu1 }
 0xc67   :  { %v913_v31 = vmul.f32 0.25, %v909_v29 }
 0xc69   :  { %v915_v32 = vadd.f32 %v913_v31, %v2061_v42 }
 0xc6b   :  { %v919_v33 = vsel %vm241_vm10, %v915_v32, -inf }
 0xc6c   :  { %920 = vmax.xlane.f32.xlu0 %v919_v33 }
 0xcaf   :  { %v807_v34 = vpop.xlane.xlu0 %806 }
 0xcb0   :  { %v811_v35 = vsub.f32 %v803_v17, %v807_v34  ;;  %v1695_v17 = vld [vmem:[%s2404_s8 + $0x1] ss:$0 sm:$0xff] }
 0xcb2   :  { %v813_v36 = vmul.f32 1.442695, %v811_v35 }
 0xcb4   :  { %1736 = vpow2.f32 %v813_v36 }
 0xcb7   :  { %v810_v39 = vpop.xlane.xlu2 %809 }
 0xcb8   :  { %v812_v40 = vsub.f32 %v804_v22, %v810_v39 }
 0xcba   :  { %v1737_v19 = vpop.eup %1736  ;;  %v815_v41 = vmul.f32 1.442695, %v812_v40  ;;  %v1662_v40 = vld [vmem:[%s2407_s11 + $0x18] sm:$0xff] }
 0xcbb   :  { %v817_v37 = vsel %vm241_vm10, %v1737_v19, 0.0  ;;  %1108 = vmatpush.bf16.msra.mxu1 %v1662_v40 }
 0xcbc   :  { %1738 = vpow2.f32 %v815_v41  ;;  %818 = vadd.xlane.f32.xlu0 %v817_v37  ;;  %v1661_v37 = vld [vmem:[%s2407_s11 + $0x10] sm:$0xff] }
 0xcbf   :  { %1109 = vmatpush.bf16.msra.mxu1 %v1661_v37 }
 0xcc2   :  { %v1739_v43 = vpop.eup %1738 }
 0xcc3   :  { %v820_v44 = vsel %vm241_vm10, %v1739_v43, 0.0 }
 0xcc4   :  { %821 = vadd.xlane.f32.xlu0 %v820_v44 }
 0xcd7   :  { %v918_v42 = vpop.xlane.xlu1 %917 }
 0xcd8   :  { %v922_v45 = vsub.f32 %v914_v27, %v918_v42  ;;  %828 = vrot.lane.b32.xlu0 %v777_v3, %s1829_s24 }
 0xcda   :  { %v924_v20 = vmul.f32 1.442695, %v922_v45 }
 0xcdc   :  { %1740 = vpow2.f32 %v924_v20 }
 0xcdf   :  { %v921_v46 = vpop.xlane.xlu0 %920 }
 0xce0   :  { %v923_v47 = vsub.f32 %v915_v32, %v921_v46 }
 0xce2   :  { %v1741_v48 = vpop.eup %1740  ;;  %v926_v49 = vmul.f32 1.442695, %v923_v47 }
 0xce3   :  { %v928_v50 = vsel %vm241_vm10, %v1741_v48, 0.0 }
 0xce4   :  { %1742 = vpow2.f32 %v926_v49  ;;  %929 = vadd.xlane.f32.xlu2 %v928_v50 }
 0xcea   :  { %v1743_v52 = vpop.eup %1742 }
 0xceb   :  { %v931_v53 = vsel %vm241_vm10, %v1743_v52, 0.0 }
 0xcec   :  { %932 = vadd.xlane.f32.xlu1 %v931_v53 }
 0xcfc   :  { %939 = vrot.lane.b32.xlu2 %v888_v9, %s1829_s24  ;;  %s1404_s24 = sshll.u32 %s2414_s18, 4  ;;  %s1833_s18 = smov [#allocation4]   ;;  %s1405_s24 = int_to_ptr.hbm [resolvable:$true] %s1404_s24 }
 0xcfd   :  { %s1415_s20 = sshll.u32 %s1833_s18, 4  ;;  %s1416_s20 = int_to_ptr.vmem [resolvable:$true] %s1415_s20 }
 0xd2f   :  { %v819_v54 = vpop.xlane.xlu0 %818 }
 0xd37   :  { %v822_v55 = vpop.xlane.xlu0 %821 }
 0xd38   :  { %1744 = vrcp.f32 %v822_v55 }
 0xd39   :  { %1746 = vrcp.f32 %v819_v54 }
 0xd3e   :  { %v1745_v56 = vpop.eup %1744 }
 0xd3f   :  { %v1747_v58 = vpop.eup %1746  ;;  %v826_v59 = vmul.f32 %v1745_v56, %v1739_v43 }
 0xd40   :  { %v825_v26 = vmul.f32 %v1747_v58, %v1737_v19 }
 0xd42   :  { %v827_v61 = vpack.c.bf16 %v826_v59, %v825_v26  ;;  %v1696_v59 = vld [vmem:[%s2405_s9 + $0x1] ss:$0 sm:$0xff] }
 0xd4a   :  { %v829_v60 = vpop.permute.xlu0 %828 }
 0xd4b   :  { %841 = vmatpush.bf16.msrb.mxu2 %v829_v60 }
 0xd4e   :  { %1539 = vmatmul.msk.bf16.vlgmr.msrb.gmra.mxu2 %vm241_vm10, %v827_v61 }
 0xd57   :  { %v930_v62 = vpop.xlane.xlu2 %929 }
 0xd58   :  { %1748 = vrcp.f32 %v930_v62  ;;  %v1697_v62 = vld [vmem:[%s2406_s10 + $0x1] ss:$0 sm:$0xff] }
 0xd5e   :  { %v1749_v30 = vpop.eup %1748 }
 0xd5f   :  { %v933_v63 = vpop.xlane.xlu1 %932  ;;  %v940_v0 = vpop.permute.xlu2 %939  ;;  %v936_v2 = vmul.f32 %v1749_v30, %v1741_v48 }
 0xd60   :  { %1750 = vrcp.f32 %v933_v63  ;;  %952 = vmatpush.bf16.msra.mxu2 %v940_v0 }
 0xd66   :  { %v1751_v1 = vpop.eup %1750 }
 0xd67   :  { %v937_v3 = vmul.f32 %v1751_v1, %v1743_v52 }
 0xd69   :  { %v938_v4 = vpack.c.bf16 %v937_v3, %v936_v2 }
 0xd6b   :  { %1557 = vmatmul.msk.bf16.vlgmr.msra.gmra.mxu2 %vm241_vm10, %v938_v4  ;;  %v1670_v4 = vld [vmem:[%s2409_s13 + $0x78] sm:$0xff] }
 0xd6c   :  { %1200 = vmatpush.bf16.msrb.mxu2 %v1670_v4 }
 0xd70   :  { %1201 = vmatpush.bf16.msrb.mxu2 %v1669_v5 }
 0xdd1   :  { %v843_v6 = vpop.f32.mrf.mxu2 }
 0xdd9   :  { %v845_v8 = vpop.f32.mrf.mxu2 }
 0xdda   :  { %v848_v9 = vpack.c.bf16 %v845_v8, %v843_v6  ;;  %v1668_v6 = vld [vmem:[%s2409_s13 + $0x68] sm:$0xff]  ;;  %v1666_v8 = vld [vmem:[%s2409_s13 + $0x58] sm:$0xff] }
 0xddb   :  { %1202 = vmatpush.bf16.msrb.mxu2 %v1668_v6 }
 0xddc   :  { %1569 = vmatmul.msk.bf16.vlgmr.msrb.gmra.mxu3 %vm241_vm10, %v848_v9  ;;  %v1665_v9 = vld [vmem:[%s2409_s13 + $0x50] sm:$0xff] }
 0xddf   :  { %1203 = vmatpush.bf16.msrb.mxu2 %v1667_v7 }
 0xde3   :  { %1204 = vmatpush.bf16.msrb.mxu2 %v1666_v8  ;;  %v1289_v8 = vld [vmem:[%s2425_s22 + $0x30] sm:$0xff] }
 0xde7   :  { %1205 = vmatpush.bf16.msrb.mxu2 %v1665_v9  ;;  %v1290_v9 = vld [vmem:[%s2425_s22 + $0x38] sm:$0xff] }
 0xdee   :  { %v954_v11 = vpop.f32.mrf.mxu2 }
 0xdf6   :  { %v956_v12 = vpop.f32.mrf.mxu2 }
 0xdf7   :  { %v959_v13 = vpack.c.bf16 %v956_v12, %v954_v11  ;;  %v1664_v11 = vld [vmem:[%s2409_s13 + $0x48] sm:$0xff]  ;;  %v1663_v12 = vld [vmem:[%s2409_s13 + $0x40] sm:$0xff] }
 0xdf8   :  { %1206 = vmatpush.bf16.msrb.mxu2 %v1664_v11  ;;  %v1302_v11 = vpack.c.bf16 %v1290_v9, %v1289_v8 }
 0xdf9   :  { %1564 = vmatmul.msk.bf16.vlgmr.msrb.gmra.mxu0 %vm241_vm10, %v959_v13  ;;  %v1698_v13 = vld [vmem:[%s2408_s12 + $0x1] ss:$0 sm:$0xff] }
 0xdfc   :  { %1207 = vmatpush.bf16.msrb.mxu2 %v1663_v12  ;;  %v1320_v12 = vsel %vm119_vm2, %v1302_v11, 0 }
 0xe5f   :  { %v1004_v51 = vpop.f32.mrf.mxu3 }
 0xe67   :  { %v1006_v22 = vpop.f32.mrf.mxu3 }
 0xe76   :  { %v981_v15 = vpop.f32.mrf.mxu0 }
 0xe77   :  { %v1005_v16 = vadd.f32 %v1004_v51, %v981_v15 }
 0xe79   :  { %v1009_v18 = vadd.f32 %v1005_v16, %v2156_v10 }
 0xe7b   :  { %v2243_v57 = vadd.f32 %v1695_v17, %v1009_v18 }
 0xe7d   :  { %v1022_v21 = vsel %vm119_vm2, %v2243_v57, 0.0 }
 0xe7e   :  { %1023 = vadd.xlane.f32.xlu0 %v1022_v21  ;;  %v983_v23 = vpop.f32.mrf.mxu0 }
 0xe7f   :  { %v1007_v24 = vadd.f32 %v1006_v22, %v983_v23 }
 0xe81   :  { %v1010_v25 = vadd.f32 %v1007_v24, %v2166_v14 }
 0xe83   :  { %v2248_v27 = vadd.f32 %v1695_v17, %v1010_v25 }
 0xe85   :  { %v1025_v28 = vsel %vm119_vm2, %v2248_v27, 0.0 }
 0xe86   :  { %1026 = vadd.xlane.f32.xlu1 %v1025_v28 }
 0xef1   :  { %v1024_v29 = vpop.xlane.xlu0 %1023 }
 0xef2   :  { %v1028_v10 = vmul.f32 %v1024_v29, %v2017_v38 }
 0xef4   :  { %v1030_v31 = vsub.f32 %v2243_v57, %v1028_v10 }
 0xef6   :  { %v1032_v32 = vmul.f32 %v1030_v31, %v1030_v31 }
 0xef8   :  { %v1034_v33 = vsel %vm119_vm2, %v1032_v32, 0.0 }
 0xef9   :  { %1035 = vadd.xlane.f32.xlu1 %v1034_v33  ;;  %v1027_v34 = vpop.xlane.xlu1 %1026 }
 0xefa   :  { %v1029_v35 = vmul.f32 %v1027_v34, %v2017_v38 }
 0xefc   :  { %v1031_v14 = vsub.f32 %v2248_v27, %v1029_v35 }
 0xefe   :  { %v1033_v36 = vmul.f32 %v1031_v14, %v1031_v14 }
 0xf00   :  { %v1037_v39 = vsel %vm119_vm2, %v1033_v36, 0.0 }
 0xf01   :  { %1038 = vadd.xlane.f32.xlu1 %v1037_v39 }
 0xf6c   :  { %v1036_v19 = vpop.xlane.xlu1 %1035 }
 0xf6d   :  { %v1040_v41 = vmul.f32 %v1036_v19, %v2017_v38 }
 0xf6f   :  { %v1042_v43 = vadd.f32 1e-05, %v1040_v41  ;;  %v1699_v41 = vld [vmem:[%s2410_s14 + $0x1] ss:$0 sm:$0xff] }
 0xf71   :  { %1752 = vrsqrt.f32 %v1042_v43  ;;  %vm1050_vm15 = vweird.f32 %v1042_v43 }
 0xf74   :  { %v1039_v44 = vpop.xlane.xlu1 %1038 }
 0xf75   :  { %v1041_v42 = vmul.f32 %v1039_v44, %v2017_v38 }
 0xf77   :  { %v1753_v45 = vpop.eup %1752  ;;  %v1043_v20 = vadd.f32 1e-05, %v1041_v42 }
 0xf78   :  { %v1045_v46 = vmul.f32 %v1753_v45, %v1042_v43  ;;  %vm1051_vm10 = vweird.f32 %v1753_v45 }
 0xf79   :  { %1754 = vrsqrt.f32 %v1043_v20  ;;  %vm1052_vm0 = vmor %vm1050_vm15, %vm1051_vm10  ;;  %vm1060_vm3 = vweird.f32 %v1043_v20 }
 0xf7a   :  { %v1046_v47 = vmul.f32 %v1753_v45, %v1045_v46 }
 0xf7c   :  { %v1047_v48 = vmul.f32 0.5, %v1046_v47 }
 0xf7e   :  { %v1048_v49 = vsub.f32 1.5, %v1047_v48  ;;  %v1297_v48 = vld [vmem:[%s2425_s22 + $0x70] sm:$0xff] }
 0xf7f   :  { %v1755_v50 = vpop.eup %1754 }
 0xf80   :  { %v1049_v52 = vmul.f32 %v1753_v45, %v1048_v49  ;;  %v1055_v53 = vmul.f32 %v1755_v50, %v1043_v20  ;;  %vm1061_vm1 = vweird.f32 %v1755_v50  ;;  %v1298_v49 = vld [vmem:[%s2425_s22 + $0x78] sm:$0xff] }
 0xf81   :  { %vm1062_vm4 = vmor %vm1060_vm3, %vm1061_vm1 }
 0xf82   :  { %v1056_v54 = vmul.f32 %v1755_v50, %v1055_v53  ;;  %v1053_v55 = vsel %vm1052_vm0, %v1753_v45, %v1049_v52 }
 0xf83   :  { %v1064_v26 = vmul.f32 %v1053_v55, %v1030_v31  ;;  %v1293_v55 = vld [vmem:[%s2425_s22 + $0x50] sm:$0xff] }
 0xf84   :  { %v1057_v56 = vmul.f32 0.5, %v1056_v54 }
 0xf85   :  { %v1069_v63 = vmul.f32 %v1696_v59, %v1064_v26 }
 0xf86   :  { %v1058_v58 = vsub.f32 1.5, %v1057_v56  ;;  %v1294_v56 = vld [vmem:[%s2425_s22 + $0x58] sm:$0xff] }
 0xf87   :  { %v1074_v1 = vadd.f32 %v1697_v62, %v1069_v63 }
 0xf88   :  { %v1059_v60 = vmul.f32 %v1755_v50, %v1058_v58  ;;  %v1304_v58 = vpack.c.bf16 %v1294_v56, %v1293_v55 }
 0xf8a   :  { %v1063_v61 = vsel %vm1062_vm4, %v1755_v50, %v1059_v60  ;;  %v1295_v50 = vld [vmem:[%s2425_s22 + $0x60] sm:$0xff]  ;;  %v1326_v60 = vsel %vm119_vm2, %v1304_v58, 0 }
 0xf8b   :  { %v1065_v0 = vmul.f32 %v1063_v61, %v1031_v14  ;;  %v1291_v61 = vld [vmem:[%s2425_s22 + $0x40] sm:$0xff] }
 0xf8d   :  { %v1070_v30 = vmul.f32 %v1696_v59, %v1065_v0 }
 0xf8f   :  { %v1075_v2 = vadd.f32 %v1697_v62, %v1070_v30  ;;  %v1292_v62 = vld [vmem:[%s2425_s22 + $0x48] sm:$0xff] }
 0xf90   :  { %v1303_v30 = vpack.c.bf16 %v1292_v62, %v1291_v61 }
 0xf91   :  { %v1076_v3 = vpack.c.bf16 %v1075_v2, %v1074_v1 }
 0xf92   :  { %v1323_v4 = vsel %vm119_vm2, %v1303_v30, 0 }
 0xf93   :  { %1586 = vmatmul.msk.bf16.vlgmr.msra.gmra.mxu1 %vm119_vm2, %v1076_v3 }
0x1010   :  { %v1111_v51 = vpop.f32.mrf.mxu1 }
0x1011   :  { %v1112_v15 = vadd.f32 %v1698_v13, %v1111_v51  ;;  %v1288_v51 = vld [vmem:[%s2425_s22 + $0x28] sm:$0xff] }
0x1013   :  { %v1118_v16 = vmul.f32 0.044715, %v1112_v15  ;;  %v1116_v35 = vmul.f32 0.5, %v1112_v15 }
0x1015   :  { %v1120_v17 = vmul.f32 %v1118_v16, %v1112_v15 }
0x1017   :  { %v1122_v18 = vmul.f32 %v1120_v17, %v1112_v15  ;;  %v1285_v17 = vld [vmem:[%s2425_s22 + $0x10] sm:$0xff] }
0x1018   :  { %v1113_v21 = vpop.f32.mrf.mxu1 }
0x1019   :  { %v1124_v22 = vadd.f32 %v1122_v18, %v1112_v15  ;;  %v1114_v23 = vadd.f32 %v1698_v13, %v1113_v21  ;;  %v1287_v13 = vld [vmem:[%s2425_s22 + $0x20] sm:$0xff]  ;;  %v1286_v18 = vld [vmem:[%s2425_s22 + $0x18] sm:$0xff] }
0x101a   :  { %v1301_v15 = vpack.c.bf16 %v1288_v51, %v1287_v13  ;;  %v1300_v21 = vpack.c.bf16 %v1286_v18, %v1285_v17 }
0x101b   :  { %v1119_v24 = vmul.f32 0.044715, %v1114_v23  ;;  %v1126_v25 = vmul.f32 0.7978846, %v1124_v22  ;;  %v1117_v14 = vmul.f32 0.5, %v1114_v23 }
0x101c   :  { %v1317_v16 = vsel %vm119_vm2, %v1301_v15, 0  ;;  %v1314_v22 = vsel %vm119_vm2, %v1300_v21, 0 }
0x101d   :  { %v1121_v28 = vmul.f32 %v1119_v24, %v1114_v23  ;;  %1756 = vtanh.f32 %v1126_v25  ;;  %v1284_v24 = vld [vmem:[%s2425_s22 + $0x8] sm:$0xff] }
0x101f   :  { %v1123_v29 = vmul.f32 %v1121_v28, %v1114_v23 }
0x1021   :  { %v1125_v10 = vadd.f32 %v1123_v29, %v1114_v23  ;;  %v1283_v23 = vld [vmem:[%s2425_s22] sm:$0xff] }
0x1022   :  { %v1299_v25 = vpack.c.bf16 %v1284_v24, %v1283_v23 }
0x1023   :  { %v1127_v31 = vmul.f32 0.7978846, %v1125_v10  ;;  %v1757_v32 = vpop.eup %1756 }
0x1024   :  { %v1130_v33 = vadd.f32 1.0, %v1757_v32  ;;  %v1311_v28 = vsel %vm119_vm2, %v1299_v25, 0 }
0x1025   :  { %1758 = vtanh.f32 %v1127_v31 }
0x1026   :  { %v1132_v39 = vmul.f32 %v1130_v33, %v1116_v35 }
0x102b   :  { %v1759_v34 = vpop.eup %1758 }
0x102c   :  { %v1131_v36 = vadd.f32 1.0, %v1759_v34 }
0x102e   :  { %v1133_v40 = vmul.f32 %v1131_v36, %v1117_v14 }
0x1030   :  { %v1134_v19 = vpack.c.bf16 %v1133_v40, %v1132_v39 }
0x1032   :  { %1208 = vmatmul.bf16.vlgmr.msrb.gmra.mxu2 %v1134_v19 }
0x10b5   :  { %v1209_v37 = vpop.f32.mrf.mxu2 }
0x10b6   :  { %v1214_v43 = vadd.f32 %v1209_v37, %v2243_v57  ;;  %v1306_v57 = vpack.c.bf16 %v1298_v49, %v1297_v48 }
0x10b8   :  { %v1221_v44 = vadd.f32 %v1699_v41, %v1214_v43  ;;  %v1332_v52 = vsel %vm119_vm2, %v1306_v57, 0  ;;  %v1700_v43 = vld [vmem:[%s2411_s15] ss:$0 sm:$0xff] }
0x10b9   :  { %1334 = vmatpush.bf16.xpose.msra.mxu0 %v1332_v52 }
0x10ba   :  { %v1225_v42 = vsel %vm119_vm2, %v1221_v44, 0.0 }
0x10bb   :  { %1226 = vadd.xlane.f32.xlu2 %v1225_v42 }
0x10bd   :  { %v1211_v45 = vpop.f32.mrf.mxu2 }
0x10be   :  { %v1215_v20 = vadd.f32 %v1211_v45, %v2248_v27  ;;  %v1296_v27 = vld [vmem:[%s2425_s22 + $0x68] sm:$0xff] }
0x10bf   :  { %v1305_v53 = vpack.c.bf16 %v1296_v27, %v1295_v50 }
0x10c0   :  { %v1222_v46 = vadd.f32 %v1699_v41, %v1215_v20 }
0x10c1   :  { %v1329_v54 = vsel %vm119_vm2, %v1305_v53, 0 }
0x10c2   :  { %v1228_v47 = vsel %vm119_vm2, %v1222_v46, 0.0  ;;  %1335 = vmatpush.bf16.xpose.msra.mxu0 %v1329_v54 }
0x10c3   :  { %1229 = vadd.xlane.f32.xlu1 %v1228_v47 }
0x10ca   :  { %1336 = vmatpush.bf16.xpose.msra.mxu0 %v1326_v60 }
0x10d2   :  { %1337 = vmatpush.bf16.xpose.msra.mxu0 %v1323_v4 }
0x10da   :  { %1338 = vmatpush.bf16.xpose.msra.mxu0 %v1320_v12 }
0x10e2   :  { %1339 = vmatpush.bf16.xpose.msra.mxu0 %v1317_v16 }
0x10ea   :  { %1340 = vmatpush.bf16.xpose.msra.mxu0 %v1314_v22 }
0x10f2   :  { %1341 = vmatpush.bf16.xpose.msra.mxu0 %v1311_v28 }
0x112e   :  { %v1227_v59 = vpop.xlane.xlu2 %1226 }
0x112f   :  { %v1231_v26 = vmul.f32 %v1227_v59, %v2017_v38 }
0x1131   :  { %v1233_v63 = vsub.f32 %v1221_v44, %v1231_v26 }
0x1133   :  { %v1235_v0 = vmul.f32 %v1233_v63, %v1233_v63 }
0x1135   :  { %v1237_v1 = vsel %vm119_vm2, %v1235_v0, 0.0 }
0x1136   :  { %1238 = vadd.xlane.f32.xlu1 %v1237_v1  ;;  %v1230_v2 = vpop.xlane.xlu1 %1229 }
0x1137   :  { %v1232_v3 = vmul.f32 %v1230_v2, %v2017_v38 }
0x1139   :  { %v1234_v5 = vsub.f32 %v1222_v46, %v1232_v3 }
0x113b   :  { %v1236_v6 = vmul.f32 %v1234_v5, %v1234_v5 }
0x113d   :  { %v1240_v7 = vsel %vm119_vm2, %v1236_v6, 0.0 }
0x113e   :  { %1241 = vadd.xlane.f32.xlu0 %v1240_v7 }
0x11a9   :  { %v1239_v29 = vpop.xlane.xlu1 %1238 }
0x11aa   :  { %v1243_v10 = vmul.f32 %v1239_v29, %v2017_v38 }
0x11ac   :  { %v1245_v31 = vadd.f32 1e-05, %v1243_v10 }
0x11ae   :  { %1760 = vrsqrt.f32 %v1245_v31  ;;  %vm1253_vm6 = vweird.f32 %v1245_v31 }
0x11b1   :  { %v1242_v32 = vpop.xlane.xlu0 %1241 }
0x11b2   :  { %v1244_v33 = vmul.f32 %v1242_v32, %v2017_v38  ;;  %v1701_v38 = vld [vmem:[%s2412_s16] ss:$0 sm:$0xff] }
0x11b4   :  { %v1761_v34 = vpop.eup %1760  ;;  %v1246_v35 = vadd.f32 1e-05, %v1244_v33 }
0x11b5   :  { %v1248_v14 = vmul.f32 %v1761_v34, %v1245_v31  ;;  %vm1254_vm5 = vweird.f32 %v1761_v34 }
0x11b6   :  { %1762 = vrsqrt.f32 %v1246_v35  ;;  %vm1255_vm7 = vmor %vm1253_vm6, %vm1254_vm5  ;;  %vm1263_vm9 = vweird.f32 %v1246_v35 }
0x11b7   :  { %v1249_v36 = vmul.f32 %v1761_v34, %v1248_v14 }
0x11b9   :  { %v1250_v39 = vmul.f32 0.5, %v1249_v36 }
0x11bb   :  { %v1251_v40 = vsub.f32 1.5, %v1250_v39 }
0x11bc   :  { %v1763_v19 = vpop.eup %1762 }
0x11bd   :  { %v1252_v41 = vmul.f32 %v1761_v34, %v1251_v40  ;;  %v1258_v37 = vmul.f32 %v1763_v19, %v1246_v35  ;;  %vm1264_vm8 = vweird.f32 %v1763_v19 }
0x11be   :  { %vm1265_vm11 = vmor %vm1263_vm9, %vm1264_vm8 }
0x11bf   :  { %v1256_v44 = vsel %vm1255_vm7, %v1761_v34, %v1252_v41  ;;  %v1259_v42 = vmul.f32 %v1763_v19, %v1258_v37 }
0x11c0   :  { %v1267_v45 = vmul.f32 %v1256_v44, %v1233_v63 }
0x11c1   :  { %v1260_v20 = vmul.f32 0.5, %v1259_v42 }
0x11c2   :  { %v1272_v46 = vmul.f32 %v1700_v43, %v1267_v45 }
0x11c3   :  { %v1261_v47 = vsub.f32 1.5, %v1260_v20 }
0x11c4   :  { %v1277_v48 = vadd.f32 %v1701_v38, %v1272_v46 }
0x11c5   :  { %v1262_v49 = vmul.f32 %v1763_v19, %v1261_v47 }
0x11c6   :  { %1636 = vst.msk [vmem:[%s2413_s17 + $0x20] sm:$0xff] %vm119_vm2, %v1277_v48 }
0x11c7   :  { %v1266_v57 = vsel %vm1265_vm11, %v1763_v19, %v1262_v49 }
0x11c8   :  { %v1268_v50 = vmul.f32 %v1266_v57, %v1234_v5 }
0x11ca   :  { %v1273_v27 = vmul.f32 %v1700_v43, %v1268_v50 }
0x11cc   :  { %v1278_v52 = vadd.f32 %v1701_v38, %v1273_v27 }
0x11ce   :  { %1637 = vst.msk [vmem:[%s2413_s17 + $0x28] sm:$0xff] %vm119_vm2, %v1278_v52  ;;  %v1282_v53 = vpack.c.bf16 %v1278_v52, %v1277_v48  ;;  %s1830_s17 = smov [#allocation2]  }
0x11cf   :  { %s1402_s21 = sshll.u32 %s1830_s17, 4  ;;  %s1403_s21 = int_to_ptr.vmem [resolvable:$true] %s1402_s21 }
0x11d0   :  { %1638 = vmatmul.msk.bf16.vlgmr.msra.gmra.mxu0 %vm119_vm2, %v1282_v53 }
0x124d   :  { %v1343_v54 = vpop.f32.mrf.mxu0 }
0x124e   :  { %1348 = vst [vmem:[#allocation2] sm:$0xff] %v1343_v54  ;;  %1350 = vmax.xlane.f32.xlu1 %v1343_v54 }
0x1255   :  { %v1345_v55 = vpop.f32.mrf.mxu0 }
0x1256   :  { %1349 = vst [vmem:[#allocation2 + $0x8] sm:$0xff] %v1345_v55  ;;  %1352 = vmax.xlane.f32.xlu0 %v1345_v55 }
0x1257   :  { %1410 = dma.vmem_to_hbm [thread:$0]  %s1403_s21, 256, %s1405_s24, [#allocation3], %s1831_s1, %s1831_s1, %s1832_s2  }
0x12c1   :  { %v1351_v56 = vpop.xlane.xlu1 %1350 }
0x12c2   :  { %v1354_v58 = vsub.f32 %v1343_v54, %v1351_v56 }
0x12c4   :  { %v1356_v59 = vmul.f32 1.442695, %v1354_v58 }
0x12c6   :  { %1764 = vpow2.f32 %v1356_v59 }
0x12c9   :  { %v1353_v26 = vpop.xlane.xlu0 %1352 }
0x12ca   :  { %v1355_v60 = vsub.f32 %v1345_v55, %v1353_v26 }
0x12cc   :  { %v1765_v61 = vpop.eup %1764  ;;  %v1358_v62 = vmul.f32 1.442695, %v1355_v60 }
0x12cd   :  { %1360 = vadd.xlane.f32.xlu1 %v1765_v61 }
0x12ce   :  { %1766 = vpow2.f32 %v1358_v62 }
0x12d4   :  { %v1767_v63 = vpop.eup %1766 }
0x12d5   :  { %1362 = vadd.xlane.f32.xlu0 %v1767_v63 }
0x1340   :  { %v1361_v0 = vpop.xlane.xlu1 %1360 }
0x1341   :  { %1768 = vrcp.f32 %v1361_v0  ;;  %v1375_v4 = vand.u32 2147483648, %v1361_v0  ;;  %v1373_v6 = vand.u32 2147483647, %v1361_v0  ;;  %vm1369_vm12 = vweird.f32 %v1361_v0 }
0x1343   :  { %v1376_v9 = vor.u32 1.1754944e-38, %v1375_v4  ;;  %vm1374_vm14 = vcmp.eq.f32.partialorder %v1373_v6, 8.507059e+37 }
0x1347   :  { %v1769_v30 = vpop.eup %1768 }
0x1348   :  { %v1365_v1 = vmul.f32 %v1769_v30, %v1361_v0  ;;  %v1363_v2 = vpop.xlane.xlu0 %1362  ;;  %vm1370_vm2 = vweird.f32 %v1769_v30 }
0x1349   :  { %1770 = vrcp.f32 %v1363_v2  ;;  %vm1371_vm13 = vmor %vm1369_vm12, %vm1370_vm2  ;;  %v1390_v16 = vand.u32 2147483648, %v1363_v2  ;;  %v1388_v18 = vand.u32 2147483647, %v1363_v2  ;;  %vm1384_vm15 = vweird.f32 %v1363_v2 }
0x134a   :  { %v1366_v3 = vsub.f32 1.0, %v1365_v1 }
0x134b   :  { %v1391_v22 = vor.u32 1.1754944e-38, %v1390_v16  ;;  %vm1389_vm1 = vcmp.eq.f32.partialorder %v1388_v18, 8.507059e+37 }
0x134c   :  { %v1367_v5 = vmul.f32 %v1769_v30, %v1366_v3 }
0x134e   :  { %v1368_v7 = vadd.f32 %v1769_v30, %v1367_v5 }
0x134f   :  { %v1771_v8 = vpop.eup %1770 }
0x1350   :  { %v1372_v11 = vsel %vm1371_vm13, %v1769_v30, %v1368_v7  ;;  %v1380_v12 = vmul.f32 %v1771_v8, %v1363_v2  ;;  %vm1385_vm10 = vweird.f32 %v1771_v8 }
0x1351   :  { %v1377_v13 = vsel %vm1374_vm14, %v1376_v9, %v1372_v11  ;;  %vm1386_vm0 = vmor %vm1384_vm15, %vm1385_vm10 }
0x1352   :  { %v1378_v51 = vmul.f32 %v1765_v61, %v1377_v13  ;;  %v1381_v15 = vsub.f32 1.0, %v1380_v12 }
0x1354   :  { %1394 = vst [vmem:[#allocation4] sm:$0xff] %v1378_v51  ;;  %v1382_v17 = vmul.f32 %v1771_v8, %v1381_v15 }
0x1356   :  { %v1383_v21 = vadd.f32 %v1771_v8, %v1382_v17 }
0x1358   :  { %v1387_v23 = vsel %vm1386_vm0, %v1771_v8, %v1383_v21 }
0x1359   :  { %v1392_v24 = vsel %vm1389_vm1, %v1391_v22, %v1387_v23 }
0x135a   :  { %v1393_v25 = vmul.f32 %v1767_v63, %v1392_v24 }
0x135c   :  { %1395 = vst [vmem:[#allocation4 + $0x8] sm:$0xff] %v1393_v25 }
0x135d   :  { %1423 = dma.vmem_to_hbm [thread:$0]  %s1416_s20, 256, %s1418_s25, [#allocation5], %s1831_s1, %s1831_s1, %s1832_s2  }
0x135e   :  { %1820 = dma.done.wait [#allocation3], 256  }
0x135f   :  { %1821 = vsyncadd [#allocation3], 4294967040 }
0x1360   :  { %1822 = dma.done.wait [#allocation5], 256  }
0x1361   :  { %1823 = vsyncadd [#allocation5], 4294967040 }
0x1362   :  { %1434 = vsyncpa [#allocation3], 1 }
0x1363   :  { %1435 = vsyncpa [#allocation5], 1 }

</bundles_post_ra>
